<compile_context>
chip_gen: v7x
topology: tpu7x:2x2x1
jax: 0.10.0
libtpu: 0.0.40
codegen_flags: <defaults>
</compile_context>

<pallas_src>
import numpy as np
import jax
import jax.numpy as jnp
from jax import lax
from jax.experimental import pallas as pl
from jax.experimental.pallas import tpu as pltpu


# --------------------------------------------------------------------- utils --

def _round_up(x: int, m: int) -> int:
    return ((x + m - 1) // m) * m


def _adaptive_pool_matrix(in_size: int, out_size: int) -> np.ndarray:
    """Row-stochastic matrix implementing torch AdaptiveAvgPool1d binning."""
    m = np.zeros((out_size, in_size), np.float32)
    for i in range(out_size):
        start = (i * in_size) // out_size
        end = -(-((i + 1) * in_size) // out_size)  # ceil((i+1)*in/out)
        m[i, start:end] = 1.0 / (end - start)
    return m


_VMEM_CAP = None


def _tpu_vmem_capacity() -> int:
    """Physical VMEM bytes of the current TPU generation (conservative fallback)."""
    global _VMEM_CAP
    if _VMEM_CAP is None:
        try:
            _VMEM_CAP = int(pltpu.get_tpu_info().vmem_capacity_bytes)
        except Exception:
            _VMEM_CAP = 64 * 2**20  # conservative (v7x per-TensorCore)
    return _VMEM_CAP


def _choose_k_tiling(k: int):
    """Exact K tiling sized against the TPU generation's VMEM capacity."""
    vmem_cap = _tpu_vmem_capacity()
    # ~40% of physical VMEM for the double-buffered bf16 fc1 weight block.
    tk_max = max(512, (int(0.40 * vmem_cap) // (2 * 256 * 2)) // 128 * 128)
    k_pad = _round_up(k, 128)
    if k_pad <= tk_max:
        return k_pad, 1
    n_k = -(-k_pad // tk_max)
    tk = _round_up(-(-k_pad // n_k), 128)
    return tk, n_k


def _vmem_limit_bytes(batch: int, tk: int, n_pad: int) -> int:
    bf16, f32 = 2, 4
    need = (
        2 * batch * tk * bf16                       # x block, double-buffered
        + 2 * tk * 256 * bf16                       # fc1 weight block, double-buffered
        + 2 * (256 * 128 + 128 * n_pad) * bf16      # w2, w3
        + 2 * (3 * 256 + 3 * 128 + n_pad) * f32     # packed bias/gamma/beta vectors
        + batch * 256 * f32                         # accumulator scratch
        + 2 * batch * n_pad * f32                   # output
    )
    cap = max(16 * 2**20, _tpu_vmem_capacity() - (8 * 2**20))
    return int(min(cap, max(16 * 2**20, need + need // 2 + (4 * 2**20))))


# ----------------------------------------------------------------- the kernel --

def _mlp_kernel(x_ref, w1_ref, vec1_ref, w2_ref, vec2_ref, w3_ref, b3_ref,
                o_ref, acc_ref):
    k = pl.program_id(0)

    @pl.when(k == 0)
    def _():
        acc_ref[...] = jnp.zeros_like(acc_ref)

    # K-tiled fc1 partial products: bf16 operands, f32 accumulation.
    acc_ref[...] += jnp.dot(x_ref[...], w1_ref[...],
                            preferred_element_type=jnp.float32)

    @pl.when(k == pl.num_programs(0) - 1)
    def _():
        eps = jnp.float32(1e-5)
        slope = jnp.float32(0.01)  # nn.LeakyReLU default negative_slope

        def bn_leaky(h, g, be):
            # Training-mode BatchNorm1d (batch mean, biased variance), two-pass
            # centered variance for numerical safety, then LeakyReLU.
            inv_n = jnp.float32(1.0 / h.shape[0])
            mu = jnp.sum(h, axis=0, keepdims=True) * inv_n
            d = h - mu
            var = jnp.sum(d * d, axis=0, keepdims=True) * inv_n
            h = d * (g * lax.rsqrt(var + eps)) + be
            return jnp.where(h >= 0, h, slope * h)

        # fc1 bias + BN1 + LeakyReLU (all f32)
        v1 = vec1_ref[...]                          # rows: [b1; gamma1; beta1]
        h = acc_ref[...] + v1[0:1, :]
        h = bn_leaky(h, v1[1:2, :], v1[2:3, :])

        # fc2 + BN2 + LeakyReLU (bf16 matmul, f32 accumulate/epilogue)
        v2 = vec2_ref[...]                          # rows: [b2; gamma2; beta2]
        h = jnp.dot(h.astype(w2_ref.dtype), w2_ref[...],
                    preferred_element_type=jnp.float32) + v2[0:1, :]
        h = bn_leaky(h, v2[1:2, :], v2[2:3, :])

        # fc3 (lane-dense padded output; wrapper slices back to num_classes)
        o_ref[...] = (jnp.dot(h.astype(w3_ref.dtype), w3_ref[...],
                              preferred_element_type=jnp.float32)
                      + b3_ref[...]).astype(o_ref.dtype)


# ----------------------------------------------------------------- the model --

def init_params(key, in_channels, num_classes):
    """PyTorch-style init: Linear ~ U(-1/sqrt(fan_in), ..), BatchNorm gamma=1 beta=0."""
    d_in = in_channels * 32 * 32
    keys = jax.random.split(key, 6)

    def linear(kw, kb, fan_in, fan_out):
        bound = 1.0 / np.sqrt(fan_in)
        w = jax.random.uniform(kw, (fan_in, fan_out), jnp.float32, -bound, bound)
        b = jax.random.uniform(kb, (1, fan_out), jnp.float32, -bound, bound)
        return w, b

    w1, b1 = linear(keys[0], keys[1], d_in, 256)
    w2, b2 = linear(keys[2], keys[3], 256, 128)
    w3, b3 = linear(keys[4], keys[5], 128, num_classes)
    g1 = jnp.ones((1, 256), jnp.float32)
    be1 = jnp.zeros((1, 256), jnp.float32)
    g2 = jnp.ones((1, 128), jnp.float32)
    be2 = jnp.zeros((1, 128), jnp.float32)
    return (w1, b1, g1, be1, w2, b2, g2, be2, w3, b3)


def prepare_params(params, in_channels, num_classes):
    """One-time param prep (hoisted out of the per-call path): dtype casts,
    fc3 lane padding, packing of the small per-layer vectors, K padding of w1."""
    (w1, b1, g1, be1, w2, b2, g2, be2, w3, b3) = params
    d_in = in_channels * 32 * 32
    assert w1.shape == (d_in, 256)

    tk, n_k = _choose_k_tiling(d_in)
    k_total = tk * n_k
    w1b = w1.astype(jnp.bfloat16)
    if k_total != d_in:
        w1b = jnp.pad(w1b, ((0, k_total - d_in), (0, 0)))

    n_pad = max(128, _round_up(num_classes, 128))
    w3p = jnp.pad(w3, ((0, 0), (0, n_pad - num_classes))).astype(jnp.bfloat16)
    b3p = jnp.pad(b3, ((0, 0), (0, n_pad - num_classes)))

    vec1 = jnp.concatenate([b1, g1, be1], axis=0)   # (3, 256) f32
    vec2 = jnp.concatenate([b2, g2, be2], axis=0)   # (3, 128) f32
    return (w1b, vec1, w2.astype(jnp.bfloat16), vec2, w3p, b3p)


def noise_extraction_classifier(x, prep, num_classes):
    """x: (B, C, H, W) NCHW float -> (B, num_classes)."""
    B, C, H, W = x.shape
    (w1b, vec1, w2b, vec2, w3p, b3p) = prep
    K = C * 32 * 32
    tk, n_k = _choose_k_tiling(K)
    k_total = tk * n_k
    assert w1b.shape == (k_total, 256)
    n_pad = w3p.shape[1]

    # --- AdaptiveAvgPool2d((32,32)) as two tiny matmuls on x (wrapper-side) ---
    # pooled[b,c,i,j] = sum_{h,w} Ph[i,h] * Pw[j,w] * x[b,c,h,w]   (exact binning)
    ph = jnp.asarray(_adaptive_pool_matrix(H, 32))   # (32, H)
    pw = jnp.asarray(_adaptive_pool_matrix(W, 32))   # (32, W)
    xf = x.astype(jnp.float32)
    pooled = jnp.einsum('bchw,jw->bchj', xf, pw, precision=lax.Precision.HIGHEST)
    pooled = jnp.einsum('ih,bchj->bcij', ph, pooled, precision=lax.Precision.HIGHEST)

    # nn.Flatten (row-major), cast to bf16 for the HBM-bound stream.
    x_flat = pooled.reshape(B, K).astype(jnp.bfloat16)
    if k_total != K:
        x_flat = jnp.pad(x_flat, ((0, 0), (0, k_total - K)))

    out = pl.pallas_call(
        _mlp_kernel,
        out_shape=jax.ShapeDtypeStruct((B, n_pad), jnp.float32),
        grid_spec=pltpu.PrefetchScalarGridSpec(
            num_scalar_prefetch=0,
            grid=(n_k,),
            in_specs=[
                pl.BlockSpec((B, tk), lambda k: (0, k)),        # pooled x (bf16)
                pl.BlockSpec((tk, 256), lambda k: (k, 0)),      # fc1 weight (bf16)
                pl.BlockSpec((3, 256), lambda k: (0, 0)),       # [b1; gamma1; beta1]
                pl.BlockSpec((256, 128), lambda k: (0, 0)),     # fc2 weight (bf16)
                pl.BlockSpec((3, 128), lambda k: (0, 0)),       # [b2; gamma2; beta2]
                pl.BlockSpec((128, n_pad), lambda k: (0, 0)),   # fc3 weight (padded, bf16)
                pl.BlockSpec((1, n_pad), lambda k: (0, 0)),     # fc3 bias (padded)
            ],
            out_specs=pl.BlockSpec((B, n_pad), lambda k: (0, 0)),
            scratch_shapes=[pltpu.VMEM((B, 256), jnp.float32)],  # fc1 accumulator
        ),
        compiler_params=pltpu.CompilerParams(
            dimension_semantics=("arbitrary",),                  # K is a reduction
            vmem_limit_bytes=_vmem_limit_bytes(B, tk, n_pad),
        ),
    )(x_flat, w1b, vec1, w2b, vec2, w3p, b3p)

    return out[:, :num_classes]


# --------------------------------------------------------------------- main --

if __name__ == "__main__":
    in_channels = 3
    num_classes = 10
    B, H, W = 2, 48, 48   # H,W not multiples of 32 -> exercises adaptive binning

    key = jax.random.PRNGKey(0)
    kx, kp = jax.random.split(key)
    x = jax.random.normal(kx, (B, in_channels, H, W), jnp.float32)

    params = init_params(kp, in_channels, num_classes)
    prep = prepare_params(params, in_channels, num_classes)   # one-time, off the hot path

    fwd = jax.jit(noise_extraction_classifier, static_argnums=(2,))
    out = jax.block_until_ready(fwd(x, prep, num_classes))
    assert out.shape == (B, num_classes)
    assert bool(jnp.all(jnp.isfinite(out)))
    print("KERNEL_OK")
</pallas_src>

<mosaic_0001>
module attributes {stable_mosaic.version = 11 : i64} {
  func.func @_mlp_kernel(%arg0: i32, %arg1: memref<2x3072xbf16, #tpu.memory_space<vmem>>, %arg2: memref<3072x256xbf16, #tpu.memory_space<vmem>>, %arg3: memref<3x256xf32, #tpu.memory_space<vmem>>, %arg4: memref<256x128xbf16, #tpu.memory_space<vmem>>, %arg5: memref<3x128xf32, #tpu.memory_space<vmem>>, %arg6: memref<128x128xbf16, #tpu.memory_space<vmem>>, %arg7: memref<1x128xf32, #tpu.memory_space<vmem>>, %arg8: memref<2x128xf32, #tpu.memory_space<vmem>>, %arg9: memref<2x256xf32, #tpu.memory_space<vmem>>) attributes {dimension_semantics = [#tpu.dimension_semantics<arbitrary>], iteration_bounds = array<i64: 1>, scalar_prefetch = 0 : i64, scratch_operands = 1 : i64, tpu.core_type = #tpu.core_type<tc>, window_params = [{transform_indices = @transform_0, window_bounds = array<i64: 2, 3072>}, {transform_indices = @transform_1, window_bounds = array<i64: 3072, 256>}, {pipeline_mode = #tpu.pipeline_mode<synchronous>, transform_indices = @transform_2, window_bounds = array<i64: 3, 256>}, {pipeline_mode = #tpu.pipeline_mode<synchronous>, transform_indices = @transform_3, window_bounds = array<i64: 256, 128>}, {pipeline_mode = #tpu.pipeline_mode<synchronous>, transform_indices = @transform_4, window_bounds = array<i64: 3, 128>}, {pipeline_mode = #tpu.pipeline_mode<synchronous>, transform_indices = @transform_5, window_bounds = array<i64: 128, 128>}, {pipeline_mode = #tpu.pipeline_mode<synchronous>, transform_indices = @transform_6, window_bounds = array<i64: 1, 128>}, {pipeline_mode = #tpu.pipeline_mode<synchronous>, transform_indices = @transform_7, window_bounds = array<i64: 2, 128>}]} {
    %c0_i32 = arith.constant 0 : i32
    %0 = arith.cmpi eq, %arg0, %c0_i32 : i32
    %1 = arith.extui %0 : i1 to i32
    %c0_i32_0 = arith.constant 0 : i32
    %2 = arith.cmpi ne, %1, %c0_i32_0 : i32
    scf.if %2 {
      %cst_10 = arith.constant 0.000000e+00 : f32
      %12 = vector.broadcast %cst_10 : f32 to vector<2x256xf32>
      %c0_11 = arith.constant 0 : index
      %c0_12 = arith.constant 0 : index
      %13 = vector.load %arg9[%c0_11, %c0_12] : memref<2x256xf32, #tpu.memory_space<vmem>>, vector<2x256xf32>
      tpu.vector_store %arg9[%c0_11, %c0_12], %12 {strides = array<i32>} : memref<2x256xf32, #tpu.memory_space<vmem>>, vector<2x256xf32>,
    } else {
    }
    %c0 = arith.constant 0 : index
    %c0_1 = arith.constant 0 : index
    %3 = vector.load %arg9[%c0, %c0_1] : memref<2x256xf32, #tpu.memory_space<vmem>>, vector<2x256xf32>
    %c0_2 = arith.constant 0 : index
    %c0_3 = arith.constant 0 : index
    %4 = vector.load %arg1[%c0_2, %c0_3] : memref<2x3072xbf16, #tpu.memory_space<vmem>>, vector<2x3072xbf16>
    %c0_4 = arith.constant 0 : index
    %c0_5 = arith.constant 0 : index
    %5 = vector.load %arg2[%c0_4, %c0_5] : memref<3072x256xbf16, #tpu.memory_space<vmem>>, vector<3072x256xbf16>
    %cst = arith.constant dense<0.000000e+00> : vector<2x256xf32>
    %6 = tpu.matmul %4, %5, %cst {dimension_numbers = #tpu.dot_dimension_numbers<[1], [0], [0], [1], [0, 0, 1, 1], [], []>} : vector<2x3072xbf16>, vector<3072x256xbf16>, vector<2x256xf32> -> vector<2x256xf32>
    %7 = arith.addf %3, %6 : vector<2x256xf32>
    %c0_6 = arith.constant 0 : index
    %c0_7 = arith.constant 0 : index
    %8 = vector.load %arg9[%c0_6, %c0_7] : memref<2x256xf32, #tpu.memory_space<vmem>>, vector<2x256xf32>
    tpu.vector_store %arg9[%c0_6, %c0_7], %7 {strides = array<i32>} : memref<2x256xf32, #tpu.memory_space<vmem>>, vector<2x256xf32>,
    %c0_i32_8 = arith.constant 0 : i32
    %9 = arith.cmpi eq, %arg0, %c0_i32_8 : i32
    %10 = arith.extui %9 : i1 to i32
    %c0_i32_9 = arith.constant 0 : i32
    %11 = arith.cmpi ne, %10, %c0_i32_9 : i32
    scf.if %11 {
      %c0_10 = arith.constant 0 : index
      %c0_11 = arith.constant 0 : index
      %12 = vector.load %arg3[%c0_10, %c0_11] : memref<3x256xf32, #tpu.memory_space<vmem>>, vector<3x256xf32>
      %c0_12 = arith.constant 0 : index
      %c0_13 = arith.constant 0 : index
      %13 = vector.load %arg9[%c0_12, %c0_13] : memref<2x256xf32, #tpu.memory_space<vmem>>, vector<2x256xf32>
      %14 = vector.extract_strided_slice %12 {offsets = [0, 0], sizes = [1, 256], strides = [1, 1]} : vector<3x256xf32> to vector<1x256xf32>
      %15 = vector.broadcast %14 : vector<1x256xf32> to vector<2x256xf32>
      %16 = arith.addf %13, %15 : vector<2x256xf32>
      %17 = vector.extract_strided_slice %12 {offsets = [1, 0], sizes = [1, 256], strides = [1, 1]} : vector<3x256xf32> to vector<1x256xf32>
      %18 = vector.extract_strided_slice %12 {offsets = [2, 0], sizes = [1, 256], strides = [1, 1]} : vector<3x256xf32> to vector<1x256xf32>
      %cst_14 = arith.constant dense<0.000000e+00> : vector<256xf32>
      %19 = vector.multi_reduction <add>, %16, %cst_14 [0] : vector<2x256xf32> to vector<256xf32>
      %20 = vector.shape_cast %19 : vector<256xf32> to vector<1x256xf32>
      %cst_15 = arith.constant 5.000000e-01 : f32
      %21 = vector.broadcast %cst_15 : f32 to vector<1x256xf32>
      %22 = arith.mulf %20, %21 : vector<1x256xf32>
      %23 = vector.broadcast %22 : vector<1x256xf32> to vector<2x256xf32>
      %24 = arith.subf %16, %23 : vector<2x256xf32>
      %25 = arith.mulf %24, %24 : vector<2x256xf32>
      %cst_16 = arith.constant dense<0.000000e+00> : vector<256xf32>
      %26 = vector.multi_reduction <add>, %25, %cst_16 [0] : vector<2x256xf32> to vector<256xf32>
      %27 = vector.shape_cast %26 : vector<256xf32> to vector<1x256xf32>
      %cst_17 = arith.constant 5.000000e-01 : f32
      %28 = vector.broadcast %cst_17 : f32 to vector<1x256xf32>
      %29 = arith.mulf %27, %28 : vector<1x256xf32>
      %cst_18 = arith.constant 9.99999974E-6 : f32
      %30 = vector.broadcast %cst_18 : f32 to vector<1x256xf32>
      %31 = arith.addf %29, %30 : vector<1x256xf32>
      %32 = math.rsqrt %31 : vector<1x256xf32>
      %33 = arith.mulf %17, %32 : vector<1x256xf32>
      %34 = vector.broadcast %33 : vector<1x256xf32> to vector<2x256xf32>
      %35 = arith.mulf %24, %34 : vector<2x256xf32>
      %36 = vector.broadcast %18 : vector<1x256xf32> to vector<2x256xf32>
      %37 = arith.addf %35, %36 : vector<2x256xf32>
      %cst_19 = arith.constant 0.000000e+00 : f32
      %38 = vector.broadcast %cst_19 : f32 to vector<2x256xf32>
      %39 = arith.cmpf oge, %37, %38 : vector<2x256xf32>
      %cst_20 = arith.constant 0.00999999977 : f32
      %40 = vector.broadcast %cst_20 : f32 to vector<2x256xf32>
      %41 = arith.mulf %40, %37 : vector<2x256xf32>
      %42 = arith.select %39, %37, %41 : vector<2x256xi1>, vector<2x256xf32>
      %c0_21 = arith.constant 0 : index
      %c0_22 = arith.constant 0 : index
      %43 = vector.load %arg5[%c0_21, %c0_22] : memref<3x128xf32, #tpu.memory_space<vmem>>, vector<3x128xf32>
      %44 = arith.truncf %42 : vector<2x256xf32> to vector<2x256xbf16>
      %c0_23 = arith.constant 0 : index
      %c0_24 = arith.constant 0 : index
      %45 = vector.load %arg4[%c0_23, %c0_24] : memref<256x128xbf16, #tpu.memory_space<vmem>>, vector<256x128xbf16>
      %cst_25 = arith.constant dense<0.000000e+00> : vector<2x128xf32>
      %46 = tpu.matmul %44, %45, %cst_25 {dimension_numbers = #tpu.dot_dimension_numbers<[1], [0], [0], [1], [0, 0, 1, 1], [], []>} : vector<2x256xbf16>, vector<256x128xbf16>, vector<2x128xf32> -> vector<2x128xf32>
      %47 = vector.extract_strided_slice %43 {offsets = [0, 0], sizes = [1, 128], strides = [1, 1]} : vector<3x128xf32> to vector<1x128xf32>
      %48 = vector.broadcast %47 : vector<1x128xf32> to vector<2x128xf32>
      %49 = arith.addf %46, %48 : vector<2x128xf32>
      %50 = vector.extract_strided_slice %43 {offsets = [1, 0], sizes = [1, 128], strides = [1, 1]} : vector<3x128xf32> to vector<1x128xf32>
      %51 = vector.extract_strided_slice %43 {offsets = [2, 0], sizes = [1, 128], strides = [1, 1]} : vector<3x128xf32> to vector<1x128xf32>
      %cst_26 = arith.constant dense<0.000000e+00> : vector<128xf32>
      %52 = vector.multi_reduction <add>, %49, %cst_26 [0] : vector<2x128xf32> to vector<128xf32>
      %53 = vector.shape_cast %52 : vector<128xf32> to vector<1x128xf32>
      %cst_27 = arith.constant 5.000000e-01 : f32
      %54 = vector.broadcast %cst_27 : f32 to vector<1x128xf32>
      %55 = arith.mulf %53, %54 : vector<1x128xf32>
      %56 = vector.broadcast %55 : vector<1x128xf32> to vector<2x128xf32>
      %57 = arith.subf %49, %56 : vector<2x128xf32>
      %58 = arith.mulf %57, %57 : vector<2x128xf32>
      %cst_28 = arith.constant dense<0.000000e+00> : vector<128xf32>
      %59 = vector.multi_reduction <add>, %58, %cst_28 [0] : vector<2x128xf32> to vector<128xf32>
      %60 = vector.shape_cast %59 : vector<128xf32> to vector<1x128xf32>
      %cst_29 = arith.constant 5.000000e-01 : f32
      %61 = vector.broadcast %cst_29 : f32 to vector<1x128xf32>
      %62 = arith.mulf %60, %61 : vector<1x128xf32>
      %cst_30 = arith.constant 9.99999974E-6 : f32
      %63 = vector.broadcast %cst_30 : f32 to vector<1x128xf32>
      %64 = arith.addf %62, %63 : vector<1x128xf32>
      %65 = math.rsqrt %64 : vector<1x128xf32>
      %66 = arith.mulf %50, %65 : vector<1x128xf32>
      %67 = vector.broadcast %66 : vector<1x128xf32> to vector<2x128xf32>
      %68 = arith.mulf %57, %67 : vector<2x128xf32>
      %69 = vector.broadcast %51 : vector<1x128xf32> to vector<2x128xf32>
      %70 = arith.addf %68, %69 : vector<2x128xf32>
      %cst_31 = arith.constant 0.000000e+00 : f32
      %71 = vector.broadcast %cst_31 : f32 to vector<2x128xf32>
      %72 = arith.cmpf oge, %70, %71 : vector<2x128xf32>
      %cst_32 = arith.constant 0.00999999977 : f32
      %73 = vector.broadcast %cst_32 : f32 to vector<2x128xf32>
      %74 = arith.mulf %73, %70 : vector<2x128xf32>
      %75 = arith.select %72, %70, %74 : vector<2x128xi1>, vector<2x128xf32>
      %76 = arith.truncf %75 : vector<2x128xf32> to vector<2x128xbf16>
      %c0_33 = arith.constant 0 : index
      %c0_34 = arith.constant 0 : index
      %77 = vector.load %arg6[%c0_33, %c0_34] : memref<128x128xbf16, #tpu.memory_space<vmem>>, vector<128x128xbf16>
      %cst_35 = arith.constant dense<0.000000e+00> : vector<2x128xf32>
      %78 = tpu.matmul %76, %77, %cst_35 {dimension_numbers = #tpu.dot_dimension_numbers<[1], [0], [0], [1], [0, 0, 1, 1], [], []>} : vector<2x128xbf16>, vector<128x128xbf16>, vector<2x128xf32> -> vector<2x128xf32>
      %c0_36 = arith.constant 0 : index
      %c0_37 = arith.constant 0 : index
      %79 = vector.load %arg7[%c0_36, %c0_37] : memref<1x128xf32, #tpu.memory_space<vmem>>, vector<1x128xf32>
      %80 = vector.broadcast %79 : vector<1x128xf32> to vector<2x128xf32>
      %81 = arith.addf %78, %80 : vector<2x128xf32>
      %c0_38 = arith.constant 0 : index
      %c0_39 = arith.constant 0 : index
      %82 = vector.load %arg8[%c0_38, %c0_39] : memref<2x128xf32, #tpu.memory_space<vmem>>, vector<2x128xf32>
      tpu.vector_store %arg8[%c0_38, %c0_39], %81 {strides = array<i32>} : memref<2x128xf32, #tpu.memory_space<vmem>>, vector<2x128xf32>,
    } else {
    }
    return
  }
  func.func @transform_0(%arg0: i32) -> (i32, i32) {
    %c0_i32 = arith.constant 0 : i32
    %c0_i32_0 = arith.constant 0 : i32
    return %c0_i32, %arg0 : i32, i32
  }
  func.func @transform_1(%arg0: i32) -> (i32, i32) {
    %c0_i32 = arith.constant 0 : i32
    %c0_i32_0 = arith.constant 0 : i32
    return %arg0, %c0_i32 : i32, i32
  }
  func.func @transform_2(%arg0: i32) -> (i32, i32) {
    %c0_i32 = arith.constant 0 : i32
    %c0_i32_0 = arith.constant 0 : i32
    %c0_i32_1 = arith.constant 0 : i32
    return %c0_i32, %c0_i32_0 : i32, i32
  }
  func.func @transform_3(%arg0: i32) -> (i32, i32) {
    %c0_i32 = arith.constant 0 : i32
    %c0_i32_0 = arith.constant 0 : i32
    %c0_i32_1 = arith.constant 0 : i32
    return %c0_i32, %c0_i32_0 : i32, i32
  }
  func.func @transform_4(%arg0: i32) -> (i32, i32) {
    %c0_i32 = arith.constant 0 : i32
    %c0_i32_0 = arith.constant 0 : i32
    %c0_i32_1 = arith.constant 0 : i32
    return %c0_i32, %c0_i32_0 : i32, i32
  }
  func.func @transform_5(%arg0: i32) -> (i32, i32) {
    %c0_i32 = arith.constant 0 : i32
    %c0_i32_0 = arith.constant 0 : i32
    %c0_i32_1 = arith.constant 0 : i32
    return %c0_i32, %c0_i32_0 : i32, i32
  }
  func.func @transform_6(%arg0: i32) -> (i32, i32) {
    %c0_i32 = arith.constant 0 : i32
    %c0_i32_0 = arith.constant 0 : i32
    %c0_i32_1 = arith.constant 0 : i32
    return %c0_i32, %c0_i32_0 : i32, i32
  }
  func.func @transform_7(%arg0: i32) -> (i32, i32) {
    %c0_i32 = arith.constant 0 : i32
    %c0_i32_0 = arith.constant 0 : i32
    %c0_i32_1 = arith.constant 0 : i32
    return %c0_i32, %c0_i32_0 : i32, i32
  }
}

</mosaic_0001>

<bundles_post_ra>
// kernel: noise_extraction_classifier.1
= control target key start
LH: loop header
LB: loop body
LE: loop exit
PB: predicated region body
PF: predicated region fallthrough
CT: control target
= control target key end

     0   :  { %12 = vsyncpa [#allocation4], 0  ;;  %s5234_s0 = inlined_call_operand.vmem [shape: bf16[2,3072], index: 0, kind: input, shape index: {}]   ;;  %s5235_s1 = inlined_call_operand.hbm [shape: bf16[3072,256], index: 1, kind: input, shape index: {}]   ;;  %s5236_s2 = inlined_call_operand.hbm [shape: f32[3,256], index: 2, kind: input, shape index: {}]   ;;  %s5237_s3 = inlined_call_operand.hbm [shape: bf16[256,128], index: 3, kind: input, shape index: {}]   ;;  %s5238_s4 = inlined_call_operand.hbm [shape: f32[3,128], index: 4, kind: input, shape index: {}]   ;;  %s5239_s5 = inlined_call_operand.hbm [shape: bf16[128,128], index: 5, kind: input, shape index: {}]   ;;  %s5240_s6 = inlined_call_operand.hbm [shape: f32[1,128], index: 6, kind: input, shape index: {}]   ;;  %s5241_s7 = inlined_call_operand.hbm [shape: f32[2,128], index: 7, kind: output, shape index: {}]  }
   0x1   :  { %13 = vsyncpa [#allocation7], 0 }
   0x2   :  { %14 = vsyncpa [#allocation10], 0 }
   0x3   :  { %15 = vsyncpa [#allocation13], 0 }
   0x4   :  { %16 = vsyncpa [#allocation5], 0  ;;  %s4915_s24 = smov [#allocation6]   ;;  %s4916_s26 = smov [#allocation9]  }
   0x5   :  { %s37_s25 = sshll.u32 %s4915_s24, 4  ;;  %s59_s27 = sshll.u32 %s4916_s26, 4  ;;  %s38_s25 = int_to_ptr.vmem [resolvable:$true] %s37_s25  ;;  %s60_s27 = int_to_ptr.vmem [resolvable:$true] %s59_s27 }
   0x6   :  { %s4751_s30 = scalar_lea.hbm %s5236_s2, 128 }
   0x7   :  { %p4752_p0 = scmp.ne.s32.totalorder %s5236_s2, %s4751_s30  ;;  %p4755_p1 = scmp.lt.u32.totalorder %s4751_s30, %s5236_s2 }
   0x9   :  { %p4757_p2 = pnand %p4755_p1, %p4752_p0 }
   0xb   :  { %4760 = shalt.err (!%p4757_p2)
}
   0xc   :  { %s4761_s12 = scalar_lea.vmem %s38_s25, 128  ;;  %p4766_p4 = scmp.lt.s32.totalorder %s38_s25, %s38_s25 }
   0xd   :  { %p4762_p3 = scmp.ne.s32.totalorder %s38_s25, %s4761_s12  ;;  %p4767_p5 = scmp.lt.s32.totalorder %s4761_s12, %s4761_s12 }
   0xf   :  { %p4768_p6 = por %p4767_p5, %p4766_p4 }
  0x11   :  { %p4769_p7 = pnand %p4768_p6, %p4762_p3 }
  0x13   :  { %4772 = shalt.err (!%p4769_p7)
}
  0x14   :  { %40 = dma.hbm_to_vmem [thread:$0]  %s5236_s2, 128, %s38_s25, [#allocation7]  }
  0x15   :  { %s4773_s17 = scalar_lea.hbm %s5238_s4, 64 }
  0x16   :  { %p4774_p8 = scmp.ne.s32.totalorder %s5238_s4, %s4773_s17  ;;  %p4777_p9 = scmp.lt.u32.totalorder %s4773_s17, %s5238_s4 }
  0x18   :  { %p4779_p10 = pnand %p4777_p9, %p4774_p8 }
  0x1a   :  { %4782 = shalt.err (!%p4779_p10)
}
  0x1b   :  { %s4783_s22 = scalar_lea.vmem %s60_s27, 64  ;;  %p4788_p12 = scmp.lt.s32.totalorder %s60_s27, %s60_s27 }
  0x1c   :  { %p4784_p11 = scmp.ne.s32.totalorder %s60_s27, %s4783_s22  ;;  %p4789_p13 = scmp.lt.s32.totalorder %s4783_s22, %s4783_s22 }
  0x1e   :  { %p4790_p0 = por %p4789_p13, %p4788_p12 }
  0x20   :  { %p4791_p1 = pnand %p4790_p0, %p4784_p11 }
  0x22   :  { %4794 = shalt.err (!%p4791_p1)
}
  0x23   :  { %62 = dma.hbm_to_vmem [thread:$0]  %s5238_s4, 64, %s60_s27, [#allocation10]  }
  0x24   :  { %s4917_s24 = smov [#allocation3]   ;;  %s4795_s29 = scalar_lea.hbm %s5235_s1, 49152 }
  0x25   :  { %s24_s25 = sshll.u32 %s4917_s24, 4  ;;  %p4796_p2 = scmp.ne.s32.totalorder %s5235_s1, %s4795_s29  ;;  %s25_s25 = int_to_ptr.vmem [resolvable:$true] %s24_s25 }
  0x26   :  { %p4799_p3 = scmp.lt.u32.totalorder %s4795_s29, %s5235_s1 }
  0x28   :  { %p4801_p4 = pnand %p4799_p3, %p4796_p2 }
  0x2a   :  { %4804 = shalt.err (!%p4801_p4)
}
  0x2b   :  { %s4805_s11 = scalar_lea.vmem %s25_s25, 49152  ;;  %p4810_p6 = scmp.lt.s32.totalorder %s25_s25, %s25_s25 }
  0x2c   :  { %p4806_p5 = scmp.ne.s32.totalorder %s25_s25, %s4805_s11  ;;  %p4811_p7 = scmp.lt.s32.totalorder %s4805_s11, %s4805_s11 }
  0x2e   :  { %p4812_p8 = por %p4811_p7, %p4810_p6 }
  0x30   :  { %p4813_p9 = pnand %p4812_p8, %p4806_p5 }
  0x32   :  { %4816 = shalt.err (!%p4813_p9)
}
  0x33   :  { %s4918_s4 = smov 128   ;;  %s4919_s27 = smov 8  }
  0x34   :  { %30 = dma.hbm_to_vmem [thread:$0]  %s5235_s1, 49152, %s25_s25, [#allocation4], %s4918_s4, %s4918_s4, %s4919_s27  }
  0x35   :  { %s4920_s14 = smov [#allocation8]   ;;  %s4817_s18 = scalar_lea.hbm %s5237_s3, 2048 }
  0x36   :  { %s46_s15 = sshll.u32 %s4920_s14, 4  ;;  %p4818_p10 = scmp.ne.s32.totalorder %s5237_s3, %s4817_s18  ;;  %s47_s15 = int_to_ptr.vmem [resolvable:$true] %s46_s15 }
  0x37   :  { %p4821_p11 = scmp.lt.u32.totalorder %s4817_s18, %s5237_s3 }
  0x39   :  { %p4823_p12 = pnand %p4821_p11, %p4818_p10 }
  0x3b   :  { %4826 = shalt.err (!%p4823_p12)
}
  0x3c   :  { %s4827_s2 = scalar_lea.vmem %s47_s15, 2048  ;;  %p4832_p0 = scmp.lt.s32.totalorder %s47_s15, %s47_s15 }
  0x3d   :  { %p4828_p13 = scmp.ne.s32.totalorder %s47_s15, %s4827_s2  ;;  %p4833_p1 = scmp.lt.s32.totalorder %s4827_s2, %s4827_s2 }
  0x3f   :  { %p4834_p2 = por %p4833_p1, %p4832_p0 }
  0x41   :  { %p4835_p3 = pnand %p4834_p2, %p4828_p13 }
  0x43   :  { %4838 = shalt.err (!%p4835_p3)
}
  0x44   :  { %s4921_s1 = smov 64   ;;  %s4922_s23 = smov 4  }
  0x45   :  { %52 = dma.hbm_to_vmem [thread:$0]  %s5237_s3, 2048, %s47_s15, [#allocation7], %s4921_s1, %s4921_s1, %s4922_s23  }
  0x46   :  { %s4923_s26 = smov [#allocation11]   ;;  %s4924_s29 = smov [#allocation12]  }
  0x47   :  { %s68_s28 = sshll.u32 %s4923_s26, 4  ;;  %s81_s30 = sshll.u32 %s4924_s29, 4  ;;  %s69_s28 = int_to_ptr.vmem [resolvable:$true] %s68_s28  ;;  %s82_s30 = int_to_ptr.vmem [resolvable:$true] %s81_s30 }
  0x48   :  { %s4839_s10 = scalar_lea.hbm %s5239_s5, 1024 }
  0x49   :  { %p4840_p4 = scmp.ne.s32.totalorder %s5239_s5, %s4839_s10  ;;  %p4843_p5 = scmp.lt.u32.totalorder %s4839_s10, %s5239_s5 }
  0x4b   :  { %p4845_p6 = pnand %p4843_p5, %p4840_p4 }
  0x4d   :  { %4848 = shalt.err (!%p4845_p6)
}
  0x4e   :  { %s4849_s3 = scalar_lea.vmem %s69_s28, 1024  ;;  %p4854_p8 = scmp.lt.s32.totalorder %s69_s28, %s69_s28 }
  0x4f   :  { %p4850_p7 = scmp.ne.s32.totalorder %s69_s28, %s4849_s3  ;;  %p4855_p9 = scmp.lt.s32.totalorder %s4849_s3, %s4849_s3 }
  0x51   :  { %p4856_p10 = por %p4855_p9, %p4854_p8 }
  0x53   :  { %p4857_p11 = pnand %p4856_p10, %p4850_p7 }
  0x55   :  { %4860 = shalt.err (!%p4857_p11)
}
  0x56   :  { %74 = dma.hbm_to_vmem [thread:$0]  %s5239_s5, 1024, %s69_s28, [#allocation10], %s4921_s1, %s4921_s1, %s4922_s23  }
  0x57   :  { %s4861_s17 = scalar_lea.hbm %s5240_s6, 16 }
  0x58   :  { %p4862_p12 = scmp.ne.s32.totalorder %s5240_s6, %s4861_s17  ;;  %p4865_p13 = scmp.lt.u32.totalorder %s4861_s17, %s5240_s6 }
  0x5a   :  { %p4867_p0 = pnand %p4865_p13, %p4862_p12 }
  0x5c   :  { %4870 = shalt.err (!%p4867_p0)
}
  0x5d   :  { %s4871_s22 = scalar_lea.vmem %s82_s30, 16  ;;  %s4875_s2 = scalar_lea.vmem %s82_s30, 32 }
  0x5e   :  { %p4872_p1 = scmp.ne.s32.totalorder %s82_s30, %s4871_s22  ;;  %p4876_p2 = scmp.lt.s32.totalorder %s82_s30, %s82_s30 }
  0x5f   :  { %p4877_p3 = scmp.lt.s32.totalorder %s4875_s2, %s4871_s22 }
  0x61   :  { %p4878_p4 = por %p4877_p3, %p4876_p2 }
  0x63   :  { %p4879_p5 = pnand %p4878_p4, %p4872_p1 }
  0x65   :  { %4882 = shalt.err (!%p4879_p5)
}
  0x66   :  { %84 = dma.hbm_to_vmem [thread:$0]  %s5240_s6, 16, %s82_s30, [#allocation13]  }
  0x67   :  { %4905 = dma.done.wait [#allocation4], 49152  }
  0x68   :  { %4906 = vsyncadd [#allocation4], 4294918144 }
  0x69   :  { %4907 = dma.done.wait [#allocation7], 2176  }
  0x6a   :  { %4908 = vsyncadd [#allocation7], 4294965120 }
  0x6b   :  { %4909 = dma.done.wait [#allocation10], 1088  }
  0x6c   :  { %4910 = vsyncadd [#allocation10], 4294966208 }
  0x6d   :  { %4911 = dma.done.wait [#allocation13], 16  }
  0x6e   :  { %4912 = vsyncadd [#allocation13], 4294967280  ;;  %v4142_v0 = vld [vmem:[#allocation3 + $0x4] ss:$8 sps:$4 sm:$0xff]   ;;  %v4146_v2 = vld [vmem:[#allocation3] ss:$8 sps:$4 sm:$0xff]   ;;  %v504_v40 = vlaneseq }
  0x6f   :  { %v4144_v1 = vld [vmem:[#allocation3 + $0x504] ss:$8 sps:$4 sm:$0xff]   ;;  %2591 = vmatprep.subr.bf16.mxu1 %v4142_v0  ;;  %v4147_v3 = vld [vmem:[#allocation3 + $0x500] ss:$8 sps:$4 sm:$0xff]   ;;  %v4148_v4 = vld [vmem:[#allocation3 + $0x14] ss:$8 sps:$4 sm:$0xff]  }
  0x70   :  { %2796 = vmatprep.subr.bf16.mxu0 %v4144_v1  ;;  %2592 = vmatpush1.bf16.msra.mxu1 %v4146_v2  ;;  %v4150_v5 = vld [vmem:[#allocation3 + $0x514] ss:$8 sps:$4 sm:$0xff]   ;;  %v4152_v6 = vld [vmem:[#allocation3 + $0x10] ss:$8 sps:$4 sm:$0xff]   ;;  %v4154_v8 = vld [vmem:[#allocation3 + $0x24] ss:$8 sps:$4 sm:$0xff]  }
  0x71   :  { %2797 = vmatpush1.bf16.msra.mxu0 %v4147_v3  ;;  %2593 = vmatprep.subr.bf16.mxu1 %v4148_v4  ;;  %v4153_v7 = vld [vmem:[#allocation3 + $0x510] ss:$8 sps:$4 sm:$0xff]   ;;  %v4156_v9 = vld [vmem:[#allocation3 + $0x524] ss:$8 sps:$4 sm:$0xff]   ;;  %v4158_v10 = vld [vmem:[#allocation3 + $0x20] ss:$8 sps:$4 sm:$0xff]  }
  0x72   :  { %2798 = vmatprep.subr.bf16.mxu0 %v4150_v5  ;;  %v4159_v11 = vld [vmem:[#allocation3 + $0x520] ss:$8 sps:$4 sm:$0xff]   ;;  %v4160_v12 = vld [vmem:[#allocation3 + $0x34] ss:$8 sps:$4 sm:$0xff]   ;;  %v4164_v14 = vld [vmem:[#allocation3 + $0x30] ss:$8 sps:$4 sm:$0xff]  }
  0x73   :  { %v4162_v13 = vld [vmem:[#allocation3 + $0x534] ss:$8 sps:$4 sm:$0xff]   ;;  %v4165_v15 = vld [vmem:[#allocation3 + $0x530] ss:$8 sps:$4 sm:$0xff]   ;;  %v4166_v16 = vld [vmem:[#allocation3 + $0x44] ss:$8 sps:$4 sm:$0xff]  }
  0x74   :  { %2594 = vmatpush1.bf16.msra.mxu1 %v4152_v6  ;;  %v4168_v17 = vld [vmem:[#allocation3 + $0x544] ss:$8 sps:$4 sm:$0xff]   ;;  %v4170_v18 = vld [vmem:[#allocation3 + $0x40] ss:$8 sps:$4 sm:$0xff]   ;;  %v4172_v20 = vld [vmem:[#allocation3 + $0x54] ss:$8 sps:$4 sm:$0xff]  }
  0x75   :  { %2799 = vmatpush1.bf16.msra.mxu0 %v4153_v7  ;;  %2595 = vmatprep.subr.bf16.mxu1 %v4154_v8  ;;  %v4171_v19 = vld [vmem:[#allocation3 + $0x540] ss:$8 sps:$4 sm:$0xff]   ;;  %v4174_v21 = vld [vmem:[#allocation3 + $0x554] ss:$8 sps:$4 sm:$0xff]   ;;  %v4176_v22 = vld [vmem:[#allocation3 + $0x50] ss:$8 sps:$4 sm:$0xff]  }
  0x76   :  { %2800 = vmatprep.subr.bf16.mxu0 %v4156_v9  ;;  %v4177_v23 = vld [vmem:[#allocation3 + $0x550] ss:$8 sps:$4 sm:$0xff]   ;;  %v4178_v24 = vld [vmem:[#allocation3 + $0x64] ss:$8 sps:$4 sm:$0xff]   ;;  %v4182_v26 = vld [vmem:[#allocation3 + $0x60] ss:$8 sps:$4 sm:$0xff]  }
  0x77   :  { %v4180_v25 = vld [vmem:[#allocation3 + $0x564] ss:$8 sps:$4 sm:$0xff]   ;;  %v4183_v27 = vld [vmem:[#allocation3 + $0x560] ss:$8 sps:$4 sm:$0xff]   ;;  %v4184_v28 = vld [vmem:[#allocation3 + $0x74] ss:$8 sps:$4 sm:$0xff]  }
  0x78   :  { %2596 = vmatpush1.bf16.msra.mxu1 %v4158_v10  ;;  %v4186_v29 = vld [vmem:[#allocation3 + $0x574] ss:$8 sps:$4 sm:$0xff]   ;;  %v4188_v30 = vld [vmem:[#allocation3 + $0x70] ss:$8 sps:$4 sm:$0xff]   ;;  %v4190_v32 = vld [vmem:[#allocation3 + $0x84] ss:$8 sps:$4 sm:$0xff]  }
  0x79   :  { %2801 = vmatpush1.bf16.msra.mxu0 %v4159_v11  ;;  %2597 = vmatprep.subr.bf16.mxu1 %v4160_v12  ;;  %v4189_v31 = vld [vmem:[#allocation3 + $0x570] ss:$8 sps:$4 sm:$0xff]   ;;  %v4192_v33 = vld [vmem:[#allocation3 + $0x584] ss:$8 sps:$4 sm:$0xff]   ;;  %v4194_v34 = vld [vmem:[#allocation3 + $0x80] ss:$8 sps:$4 sm:$0xff]  }
  0x7a   :  { %2802 = vmatprep.subr.bf16.mxu0 %v4162_v13  ;;  %v4195_v35 = vld [vmem:[#allocation3 + $0x580] ss:$8 sps:$4 sm:$0xff]   ;;  %v4196_v36 = vld [vmem:[#allocation3 + $0x94] ss:$8 sps:$4 sm:$0xff]   ;;  %v4925_v38 = vmov 1966171168  }
  0x7b   :  { %v4198_v37 = vld [vmem:[#allocation3 + $0x594] ss:$8 sps:$4 sm:$0xff]   ;;  %v502_v39 = vunpack.c.l.s4 %v4925_v38  ;;  %v4200_v41 = vld [vmem:[#allocation3 + $0x90] ss:$8 sps:$4 sm:$0xff]   ;;  %v4202_v43 = vld [vmem:[#allocation3 + $0xa4] ss:$8 sps:$4 sm:$0xff]  }
  0x7c   :  { %2598 = vmatpush1.bf16.msra.mxu1 %v4164_v14  ;;  %v4201_v42 = vld [vmem:[#allocation3 + $0x590] ss:$8 sps:$4 sm:$0xff]   ;;  %v4204_v44 = vld [vmem:[#allocation3 + $0x5a4] ss:$8 sps:$4 sm:$0xff]   ;;  %v5042_v46 = vshrl.u32 %v504_v40, 7  ;;  %v5050_v52 = vld [vmem:[%s5234_s0] sm:$0xff] }
  0x7d   :  { %2803 = vmatpush1.bf16.msra.mxu0 %v4165_v15  ;;  %2599 = vmatprep.subr.bf16.mxu1 %v4166_v16  ;;  %v503_v45 = vunpack.c.0.s8 %v502_v39  ;;  %v4206_v47 = vld [vmem:[#allocation3 + $0xa0] ss:$8 sps:$4 sm:$0xff]   ;;  %v4208_v49 = vld [vmem:[#allocation3 + $0xb4] ss:$8 sps:$4 sm:$0xff]   ;;  %v4212_v53 = vld [vmem:[#allocation3 + $0xb0] ss:$8 sps:$4 sm:$0xff]  }
  0x7e   :  { %2804 = vmatprep.subr.bf16.mxu0 %v4168_v17  ;;  %v4207_v48 = vld [vmem:[#allocation3 + $0x5a0] ss:$8 sps:$4 sm:$0xff]   ;;  %v4210_v50 = vld [vmem:[#allocation3 + $0x5b4] ss:$8 sps:$4 sm:$0xff]   ;;  %v4213_v55 = vld [vmem:[#allocation3 + $0x5b0] ss:$8 sps:$4 sm:$0xff]  }
  0x7f   :  { %v5045_v51 = vsub.s32 %v503_v45, %v5042_v46  ;;  %v111_v56 = vld [vmem:[%s5234_s0 + $0x8] sm:$0xff]  ;;  %v4220_v1 = vld [vmem:[#allocation3 + $0xd4] ss:$8 sps:$4 sm:$0xff]   ;;  %v4224_v5 = vld [vmem:[#allocation3 + $0xd0] ss:$8 sps:$4 sm:$0xff]   ;;  %vm3143_vm0 = vcmask 1041408  }
  0x80   :  { %2600 = vmatpush1.bf16.msra.mxu1 %v4170_v18  ;;  %v4214_v57 = vld [vmem:[#allocation3 + $0xc4] ss:$8 sps:$4 sm:$0xff]   ;;  %v4218_v63 = vld [vmem:[#allocation3 + $0xc0] ss:$8 sps:$4 sm:$0xff]   ;;  %v4222_v2 = vld [vmem:[#allocation3 + $0x5d4] ss:$8 sps:$4 sm:$0xff]   ;;  %v549_v9 = vcombine.high %v111_v56, %v111_v56 }
  0x81   :  { %2805 = vmatpush1.bf16.msra.mxu0 %v4171_v19  ;;  %2601 = vmatprep.subr.bf16.mxu1 %v4172_v20  ;;  %v507_v54 = vrot.slane %v5050_v52, %v5045_v51  ;;  %v4216_v58 = vld [vmem:[#allocation3 + $0x5c4] ss:$8 sps:$4 sm:$0xff]   ;;  %v556_v60 = vrot.slane %v111_v56, %v5045_v51  ;;  %v4219_v0 = vld [vmem:[#allocation3 + $0x5c0] ss:$8 sps:$4 sm:$0xff]   ;;  %v4225_v6 = vld [vmem:[#allocation3 + $0x5d0] ss:$8 sps:$4 sm:$0xff]  }
  0x82   :  { %2806 = vmatprep.subr.bf16.mxu0 %v4174_v21  ;;  %v4226_v7 = vld [vmem:[#allocation3 + $0xe4] ss:$8 sps:$4 sm:$0xff]   ;;  %v4230_v10 = vld [vmem:[#allocation3 + $0xe0] ss:$8 sps:$4 sm:$0xff]   ;;  %v4232_v12 = vld [vmem:[#allocation3 + $0xf4] ss:$8 sps:$4 sm:$0xff]   ;;  %v5068_v14 = vrot.slane %v549_v9, %v5045_v51 }
  0x83   :  { %v515_v59 = vcombine.high %v507_v54, %v507_v54  ;;  %v564_v62 = vcombine.high %v556_v60, %v556_v60  ;;  %v4228_v8 = vld [vmem:[#allocation3 + $0x5e4] ss:$8 sps:$4 sm:$0xff]   ;;  %v4231_v11 = vld [vmem:[#allocation3 + $0x5e0] ss:$8 sps:$4 sm:$0xff]   ;;  %v4234_v13 = vld [vmem:[#allocation3 + $0x5f4] ss:$8 sps:$4 sm:$0xff]   ;;  %v5071_v15 = vrot.slane %v556_v60, %v5045_v51  ;;  %v5076_v21 = vrot.slane %v507_v54, %v5045_v51 }
  0x84   :  { %2602 = vmatpush1.bf16.msra.mxu1 %v4176_v22  ;;  %v4236_v16 = vld [vmem:[#allocation3 + $0xf0] ss:$8 sps:$4 sm:$0xff]   ;;  %v4241_v18 = vld [vmem:[#allocation3 + $0x104] ss:$8 sps:$4 sm:$0xff]   ;;  %v565_v20 = vcombine.high %v5068_v14, %v5068_v14  ;;  %v4284_v54 = vld [vmem:[#allocation3 + $0x174] ss:$8 sps:$4 sm:$0xff]  }
  0x85   :  { %2807 = vmatpush1.bf16.msra.mxu0 %v4177_v23  ;;  %2603 = vmatprep.subr.bf16.mxu1 %v4178_v24  ;;  %v5059_v61 = vrot.slane %v515_v59, %v5045_v51  ;;  %v5062_v3 = vrot.slane %v564_v62, %v5045_v51  ;;  %v4237_v17 = vld [vmem:[#allocation3 + $0x5f0] ss:$8 sps:$4 sm:$0xff]   ;;  %v4245_v19 = vld [vmem:[#allocation3 + $0x604] ss:$8 sps:$4 sm:$0xff]   ;;  %v594_v22 = vcombine.high %v5071_v15, %v5071_v15  ;;  %v4239_v23 = vld [vmem:[#allocation3 + $0x100] ss:$8 sps:$4 sm:$0xff]  }
  0x86   :  { %2808 = vmatprep.subr.bf16.mxu0 %v4180_v25  ;;  %v4243_v24 = vld [vmem:[#allocation3 + $0x600] ss:$8 sps:$4 sm:$0xff]   ;;  %v4248_v25 = vld [vmem:[#allocation3 + $0x114] ss:$8 sps:$4 sm:$0xff]   ;;  %v4261_v38 = vld [vmem:[#allocation3 + $0x630] ss:$8 sps:$4 sm:$0xff]  }
  0x87   :  { %2623 = vmatprep.mubr.bf16.mxu1 %v5059_v61  ;;  %v596_v4 = vcombine.high %v5062_v3, %v5062_v3  ;;  %v4266_v39 = vld [vmem:[#allocation3 + $0x144] ss:$8 sps:$4 sm:$0xff]   ;;  %v4270_v45 = vld [vmem:[#allocation3 + $0x150] ss:$8 sps:$4 sm:$0xff]   ;;  %v4288_v60 = vld [vmem:[#allocation3 + $0x180] ss:$8 sps:$4 sm:$0xff]  }
  0x88   :  { %2604 = vmatpush1.bf16.msra.mxu1 %v4182_v26  ;;  %v4251_v26 = vld [vmem:[#allocation3 + $0x614] ss:$8 sps:$4 sm:$0xff]   ;;  %v4269_v40 = vld [vmem:[#allocation3 + $0x644] ss:$8 sps:$4 sm:$0xff]   ;;  %v4282_v56 = vld [vmem:[#allocation3 + $0x170] ss:$8 sps:$4 sm:$0xff]  }
  0x89   :  { %2809 = vmatpush1.bf16.msra.mxu0 %v4183_v27  ;;  %2605 = vmatprep.subr.bf16.mxu1 %v4184_v28  ;;  %v547_v27 = vcombine.high %v5059_v61, %v5059_v61  ;;  %v5083_v28 = vrot.slane %v565_v20, %v5045_v51  ;;  %v4293_v59 = vld [vmem:[#allocation3 + $0x684] ss:$8 sps:$4 sm:$0xff]   ;;  %v4291_v61 = vld [vmem:[#allocation3 + $0x680] ss:$8 sps:$4 sm:$0xff]   ;;  %v4296_v62 = vld [vmem:[#allocation3 + $0x194] ss:$8 sps:$4 sm:$0xff]  }
  0x8a   :  { %2810 = vmatprep.subr.bf16.mxu0 %v4186_v29  ;;  %2828 = vmatprep.mubr.bf16.mxu0 %v596_v4  ;;  %v4246_v29 = vld [vmem:[#allocation3 + $0x110] ss:$8 sps:$4 sm:$0xff]   ;;  %v4305_v4 = vld [vmem:[#allocation3 + $0x6a4] ss:$8 sps:$4 sm:$0xff]   ;;  %vm4928_vm2 = vmmov 0  }
  0x8b   :  { %v4306_v9 = vld [vmem:[#allocation3 + $0x1b0] ss:$8 sps:$4 sm:$0xff]  }
  0x8c   :  { %2606 = vmatpush1.bf16.msra.mxu1 %v4188_v30  ;;  %v4249_v30 = vld [vmem:[#allocation3 + $0x610] ss:$8 sps:$4 sm:$0xff]  }
  0x8d   :  { %2811 = vmatpush1.bf16.msra.mxu0 %v4189_v31  ;;  %2607 = vmatprep.subr.bf16.mxu1 %v4190_v32  ;;  %v4254_v31 = vld [vmem:[#allocation3 + $0x124] ss:$8 sps:$4 sm:$0xff]   ;;  %v4321_v20 = vld [vmem:[#allocation3 + $0x6d0] ss:$8 sps:$4 sm:$0xff]  }
  0x8e   :  { %2812 = vmatprep.subr.bf16.mxu0 %v4192_v33  ;;  %v4257_v32 = vld [vmem:[#allocation3 + $0x624] ss:$8 sps:$4 sm:$0xff]   ;;  %v4252_v33 = vld [vmem:[#allocation3 + $0x120] ss:$8 sps:$4 sm:$0xff]  }
  0x90   :  { %2608 = vmatpush1.bf16.msra.mxu1 %v4194_v34  ;;  %v4255_v34 = vld [vmem:[#allocation3 + $0x620] ss:$8 sps:$4 sm:$0xff]  }
  0x91   :  { %2813 = vmatpush1.bf16.msra.mxu0 %v4195_v35  ;;  %2609 = vmatprep.subr.bf16.mxu1 %v4196_v36  ;;  %v4260_v35 = vld [vmem:[#allocation3 + $0x134] ss:$8 sps:$4 sm:$0xff]  }
  0x92   :  { %2814 = vmatprep.subr.bf16.mxu0 %v4198_v37  ;;  %v4263_v36 = vld [vmem:[#allocation3 + $0x634] ss:$8 sps:$4 sm:$0xff]   ;;  %v4258_v37 = vld [vmem:[#allocation3 + $0x130] ss:$8 sps:$4 sm:$0xff]  }
  0x94   :  { %2610 = vmatpush1.bf16.msra.mxu1 %v4200_v41  ;;  %v4264_v41 = vld [vmem:[#allocation3 + $0x140] ss:$8 sps:$4 sm:$0xff]  }
  0x95   :  { %2815 = vmatpush1.bf16.msra.mxu0 %v4201_v42  ;;  %2611 = vmatprep.subr.bf16.mxu1 %v4202_v43  ;;  %v4267_v42 = vld [vmem:[#allocation3 + $0x640] ss:$8 sps:$4 sm:$0xff]   ;;  %v4272_v43 = vld [vmem:[#allocation3 + $0x154] ss:$8 sps:$4 sm:$0xff]  }
  0x96   :  { %2816 = vmatprep.subr.bf16.mxu0 %v4204_v44  ;;  %v4275_v44 = vld [vmem:[#allocation3 + $0x654] ss:$8 sps:$4 sm:$0xff]  }
  0x98   :  { %2612 = vmatpush1.bf16.msra.mxu1 %v4206_v47  ;;  %v4273_v47 = vld [vmem:[#allocation3 + $0x650] ss:$8 sps:$4 sm:$0xff]  }
  0x99   :  { %2817 = vmatpush1.bf16.msra.mxu0 %v4207_v48  ;;  %2613 = vmatprep.subr.bf16.mxu1 %v4208_v49  ;;  %v4278_v48 = vld [vmem:[#allocation3 + $0x164] ss:$8 sps:$4 sm:$0xff]  }
  0x9a   :  { %2818 = vmatprep.subr.bf16.mxu0 %v4210_v50  ;;  %v4281_v49 = vld [vmem:[#allocation3 + $0x664] ss:$8 sps:$4 sm:$0xff]   ;;  %v4276_v50 = vld [vmem:[#allocation3 + $0x160] ss:$8 sps:$4 sm:$0xff]  }
  0x9c   :  { %2614 = vmatpush1.bf16.msra.mxu1 %v4212_v53  ;;  %v4279_v53 = vld [vmem:[#allocation3 + $0x660] ss:$8 sps:$4 sm:$0xff]  }
  0x9d   :  { %2819 = vmatpush1.bf16.msra.mxu0 %v4213_v55  ;;  %2615 = vmatprep.subr.bf16.mxu1 %v4214_v57  ;;  %v4287_v55 = vld [vmem:[#allocation3 + $0x674] ss:$8 sps:$4 sm:$0xff]   ;;  %v4285_v57 = vld [vmem:[#allocation3 + $0x670] ss:$8 sps:$4 sm:$0xff]  }
  0x9e   :  { %2820 = vmatprep.subr.bf16.mxu0 %v4216_v58  ;;  %v4290_v58 = vld [vmem:[#allocation3 + $0x184] ss:$8 sps:$4 sm:$0xff]  }
  0xa0   :  { %2616 = vmatpush1.bf16.msra.mxu1 %v4218_v63  ;;  %v4299_v63 = vld [vmem:[#allocation3 + $0x694] ss:$8 sps:$4 sm:$0xff]  }
  0xa1   :  { %2821 = vmatpush1.bf16.msra.mxu0 %v4219_v0  ;;  %2617 = vmatprep.subr.bf16.mxu1 %v4220_v1  ;;  %v4294_v0 = vld [vmem:[#allocation3 + $0x190] ss:$8 sps:$4 sm:$0xff]  }
  0xa2   :  { %2822 = vmatprep.subr.bf16.mxu0 %v4222_v2  ;;  %v4297_v1 = vld [vmem:[#allocation3 + $0x690] ss:$8 sps:$4 sm:$0xff]   ;;  %v4302_v2 = vld [vmem:[#allocation3 + $0x1a4] ss:$8 sps:$4 sm:$0xff]  }
  0xa4   :  { %2618 = vmatpush1.bf16.msra.mxu1 %v4224_v5  ;;  %v4300_v5 = vld [vmem:[#allocation3 + $0x1a0] ss:$8 sps:$4 sm:$0xff]  }
  0xa5   :  { %2823 = vmatpush1.bf16.msra.mxu0 %v4225_v6  ;;  %2619 = vmatprep.subr.bf16.mxu1 %v4226_v7  ;;  %v4303_v6 = vld [vmem:[#allocation3 + $0x6a0] ss:$8 sps:$4 sm:$0xff]   ;;  %v4308_v7 = vld [vmem:[#allocation3 + $0x1b4] ss:$8 sps:$4 sm:$0xff]  }
  0xa6   :  { %2824 = vmatprep.subr.bf16.mxu0 %v4228_v8  ;;  %v4311_v8 = vld [vmem:[#allocation3 + $0x6b4] ss:$8 sps:$4 sm:$0xff]  }
  0xa8   :  { %2620 = vmatpush1.bf16.msra.mxu1 %v4230_v10  ;;  %v4309_v10 = vld [vmem:[#allocation3 + $0x6b0] ss:$8 sps:$4 sm:$0xff]  }
  0xa9   :  { %2825 = vmatpush1.bf16.msra.mxu0 %v4231_v11  ;;  %2621 = vmatprep.subr.bf16.mxu1 %v4232_v12  ;;  %v4314_v11 = vld [vmem:[#allocation3 + $0x1c4] ss:$8 sps:$4 sm:$0xff]  }
  0xaa   :  { %2826 = vmatprep.subr.bf16.mxu0 %v4234_v13  ;;  %v4317_v12 = vld [vmem:[#allocation3 + $0x6c4] ss:$8 sps:$4 sm:$0xff]   ;;  %v4312_v13 = vld [vmem:[#allocation3 + $0x1c0] ss:$8 sps:$4 sm:$0xff]  }
  0xac   :  { %2622 = vmatpush1.bf16.msra.mxu1 %v4236_v16  ;;  %v4315_v16 = vld [vmem:[#allocation3 + $0x6c0] ss:$8 sps:$4 sm:$0xff]  }
  0xad   :  { %2827 = vmatpush1.bf16.msra.mxu0 %v4237_v17  ;;  %2632 = vmatprep.subr.bf16.mxu1 %v4241_v18  ;;  %v4320_v17 = vld [vmem:[#allocation3 + $0x1d4] ss:$8 sps:$4 sm:$0xff]  }
  0xae   :  { %2837 = vmatprep.subr.bf16.mxu0 %v4245_v19  ;;  %v4323_v18 = vld [vmem:[#allocation3 + $0x6d4] ss:$8 sps:$4 sm:$0xff]   ;;  %v4318_v19 = vld [vmem:[#allocation3 + $0x1d0] ss:$8 sps:$4 sm:$0xff]  }
  0xaf   :  { %2624 = vmatmul.mubr.bf16.vlgmr.msra.gmra.mrb[0].mxu1 %v5076_v21 }
  0xb0   :  { %2829 = vmatmul.mubr.bf16.vlgmr.msra.gmra.mrb[0].mxu0 %v594_v22  ;;  %2633 = vmatpush1.bf16.msra.mxu1 %v4239_v23  ;;  %v4326_v22 = vld [vmem:[#allocation3 + $0x1e4] ss:$8 sps:$4 sm:$0xff]  }
  0xb1   :  { %2838 = vmatpush1.bf16.msra.mxu0 %v4243_v24  ;;  %2634 = vmatprep.subr.bf16.mxu1 %v4248_v25  ;;  %v4329_v23 = vld [vmem:[#allocation3 + $0x6e4] ss:$8 sps:$4 sm:$0xff]   ;;  %v500_v24 = vcombine.high %v5050_v52, %v5050_v52  ;;  %v4324_v25 = vld [vmem:[#allocation3 + $0x1e0] ss:$8 sps:$4 sm:$0xff]  }
  0xb2   :  { %2839 = vmatprep.subr.bf16.mxu0 %v4251_v26  ;;  %2664 = vmatprep.mubr.bf16.mxu1 %v547_v27  ;;  %v4327_v26 = vld [vmem:[#allocation3 + $0x6e0] ss:$8 sps:$4 sm:$0xff]   ;;  %v4332_v27 = vld [vmem:[#allocation3 + $0x1f4] ss:$8 sps:$4 sm:$0xff]  }
  0xb3   :  { %2869 = vmatprep.mubr.bf16.mxu0 %v5083_v28 }
  0xb4   :  { %2635 = vmatpush1.bf16.msra.mxu1 %v4246_v29  ;;  %v4335_v29 = vld [vmem:[#allocation3 + $0x6f4] ss:$8 sps:$4 sm:$0xff]  }
  0xb5   :  { %2840 = vmatpush1.bf16.msra.mxu0 %v4249_v30  ;;  %2636 = vmatprep.subr.bf16.mxu1 %v4254_v31  ;;  %v5090_v30 = vrot.slane %v500_v24, %v5045_v51  ;;  %v4330_v31 = vld [vmem:[#allocation3 + $0x1f0] ss:$8 sps:$4 sm:$0xff]  }
  0xb6   :  { %2841 = vmatprep.subr.bf16.mxu0 %v4257_v32  ;;  %v4333_v32 = vld [vmem:[#allocation3 + $0x6f0] ss:$8 sps:$4 sm:$0xff]  }
  0xb7   :  { %v516_v52 = vcombine.high %v5090_v30, %v5090_v30  ;;  %v4405_v24 = vld [vmem:[#allocation3 + $0x7b0] ss:$8 sps:$4 sm:$0xff]  }
  0xb8   :  { %2637 = vmatpush1.bf16.msra.mxu1 %v4252_v33  ;;  %v4338_v33 = vld [vmem:[#allocation3 + $0x204] ss:$8 sps:$4 sm:$0xff]  }
  0xb9   :  { %2842 = vmatpush1.bf16.msra.mxu0 %v4255_v34  ;;  %2638 = vmatprep.subr.bf16.mxu1 %v4260_v35  ;;  %v4341_v34 = vld [vmem:[#allocation3 + $0x704] ss:$8 sps:$4 sm:$0xff]   ;;  %v545_v35 = vcombine.high %v5076_v21, %v5076_v21  ;;  %v4345_v21 = vld [vmem:[#allocation3 + $0x710] ss:$8 sps:$4 sm:$0xff]  }
  0xba   :  { %2843 = vmatprep.subr.bf16.mxu0 %v4263_v36  ;;  %v5098_v36 = vrot.slane %v5068_v14, %v5045_v51  ;;  %v4342_v14 = vld [vmem:[#allocation3 + $0x210] ss:$8 sps:$4 sm:$0xff]  }
  0xbc   :  { %2639 = vmatpush1.bf16.msra.mxu1 %v4258_v37  ;;  %v4336_v37 = vld [vmem:[#allocation3 + $0x200] ss:$8 sps:$4 sm:$0xff]  }
  0xbd   :  { %2844 = vmatpush1.bf16.msra.mxu0 %v4261_v38  ;;  %2640 = vmatprep.subr.bf16.mxu1 %v4266_v39  ;;  %v4339_v38 = vld [vmem:[#allocation3 + $0x700] ss:$8 sps:$4 sm:$0xff]   ;;  %v4344_v39 = vld [vmem:[#allocation3 + $0x214] ss:$8 sps:$4 sm:$0xff]  }
  0xbe   :  { %2845 = vmatprep.subr.bf16.mxu0 %v4269_v40  ;;  %v4347_v40 = vld [vmem:[#allocation3 + $0x714] ss:$8 sps:$4 sm:$0xff]  }
  0xc0   :  { %2641 = vmatpush1.bf16.msra.mxu1 %v4264_v41  ;;  %v5101_v41 = vrot.slane %v516_v52, %v5045_v51  ;;  %v4422_v52 = vld [vmem:[#allocation3 + $0x2e4] ss:$8 sps:$4 sm:$0xff]  }
  0xc1   :  { %2846 = vmatpush1.bf16.msra.mxu0 %v4267_v42  ;;  %2642 = vmatprep.subr.bf16.mxu1 %v4272_v43  ;;  %v597_v42 = vcombine.high %v5083_v28, %v5083_v28  ;;  %v4350_v43 = vld [vmem:[#allocation3 + $0x224] ss:$8 sps:$4 sm:$0xff]   ;;  %v4356_v28 = vld [vmem:[#allocation3 + $0x234] ss:$8 sps:$4 sm:$0xff]  }
  0xc2   :  { %2847 = vmatprep.subr.bf16.mxu0 %v4275_v44  ;;  %v4353_v44 = vld [vmem:[#allocation3 + $0x724] ss:$8 sps:$4 sm:$0xff]  }
  0xc4   :  { %2643 = vmatpush1.bf16.msra.mxu1 %v4270_v45  ;;  %v4348_v45 = vld [vmem:[#allocation3 + $0x220] ss:$8 sps:$4 sm:$0xff]  }
  0xc5   :  { %2848 = vmatpush1.bf16.msra.mxu0 %v4273_v47  ;;  %2644 = vmatprep.subr.bf16.mxu1 %v4278_v48  ;;  %v4351_v47 = vld [vmem:[#allocation3 + $0x720] ss:$8 sps:$4 sm:$0xff]   ;;  %v4359_v48 = vld [vmem:[#allocation3 + $0x734] ss:$8 sps:$4 sm:$0xff]  }
  0xc6   :  { %2849 = vmatprep.subr.bf16.mxu0 %v4281_v49  ;;  %v4354_v49 = vld [vmem:[#allocation3 + $0x230] ss:$8 sps:$4 sm:$0xff]  }
  0xc8   :  { %2645 = vmatpush1.bf16.msra.mxu1 %v4276_v50  ;;  %v4357_v50 = vld [vmem:[#allocation3 + $0x730] ss:$8 sps:$4 sm:$0xff]  }
  0xc9   :  { %2850 = vmatpush1.bf16.msra.mxu0 %v4279_v53  ;;  %2646 = vmatprep.subr.bf16.mxu1 %v4284_v54  ;;  %v4362_v53 = vld [vmem:[#allocation3 + $0x244] ss:$8 sps:$4 sm:$0xff]  }
  0xca   :  { %2851 = vmatprep.subr.bf16.mxu0 %v4287_v55  ;;  %v4365_v54 = vld [vmem:[#allocation3 + $0x744] ss:$8 sps:$4 sm:$0xff]   ;;  %v4360_v55 = vld [vmem:[#allocation3 + $0x240] ss:$8 sps:$4 sm:$0xff]  }
  0xcc   :  { %2647 = vmatpush1.bf16.msra.mxu1 %v4282_v56  ;;  %v4363_v56 = vld [vmem:[#allocation3 + $0x740] ss:$8 sps:$4 sm:$0xff]  }
  0xcd   :  { %2852 = vmatpush1.bf16.msra.mxu0 %v4285_v57  ;;  %2648 = vmatprep.subr.bf16.mxu1 %v4290_v58  ;;  %v4368_v57 = vld [vmem:[#allocation3 + $0x254] ss:$8 sps:$4 sm:$0xff]  }
  0xce   :  { %2853 = vmatprep.subr.bf16.mxu0 %v4293_v59  ;;  %v4371_v58 = vld [vmem:[#allocation3 + $0x754] ss:$8 sps:$4 sm:$0xff]   ;;  %v4366_v59 = vld [vmem:[#allocation3 + $0x250] ss:$8 sps:$4 sm:$0xff]  }
  0xd0   :  { %2649 = vmatpush1.bf16.msra.mxu1 %v4288_v60  ;;  %v4369_v60 = vld [vmem:[#allocation3 + $0x750] ss:$8 sps:$4 sm:$0xff]  }
  0xd1   :  { %2854 = vmatpush1.bf16.msra.mxu0 %v4291_v61  ;;  %2650 = vmatprep.subr.bf16.mxu1 %v4296_v62  ;;  %v4374_v61 = vld [vmem:[#allocation3 + $0x264] ss:$8 sps:$4 sm:$0xff]  }
  0xd2   :  { %2855 = vmatprep.subr.bf16.mxu0 %v4299_v63  ;;  %v4377_v62 = vld [vmem:[#allocation3 + $0x764] ss:$8 sps:$4 sm:$0xff]   ;;  %v4372_v63 = vld [vmem:[#allocation3 + $0x260] ss:$8 sps:$4 sm:$0xff]  }
  0xd4   :  { %2651 = vmatpush1.bf16.msra.mxu1 %v4294_v0  ;;  %v4375_v0 = vld [vmem:[#allocation3 + $0x760] ss:$8 sps:$4 sm:$0xff]  }
  0xd5   :  { %2856 = vmatpush1.bf16.msra.mxu0 %v4297_v1  ;;  %2652 = vmatprep.subr.bf16.mxu1 %v4302_v2  ;;  %v4380_v1 = vld [vmem:[#allocation3 + $0x274] ss:$8 sps:$4 sm:$0xff]  }
  0xd6   :  { %2857 = vmatprep.subr.bf16.mxu0 %v4305_v4  ;;  %v4383_v2 = vld [vmem:[#allocation3 + $0x774] ss:$8 sps:$4 sm:$0xff]   ;;  %v4378_v4 = vld [vmem:[#allocation3 + $0x270] ss:$8 sps:$4 sm:$0xff]  }
  0xd8   :  { %2653 = vmatpush1.bf16.msra.mxu1 %v4300_v5  ;;  %v4381_v5 = vld [vmem:[#allocation3 + $0x770] ss:$8 sps:$4 sm:$0xff]  }
  0xd9   :  { %2858 = vmatpush1.bf16.msra.mxu0 %v4303_v6  ;;  %2654 = vmatprep.subr.bf16.mxu1 %v4308_v7  ;;  %v4386_v6 = vld [vmem:[#allocation3 + $0x284] ss:$8 sps:$4 sm:$0xff]  }
  0xda   :  { %2859 = vmatprep.subr.bf16.mxu0 %v4311_v8  ;;  %v4389_v7 = vld [vmem:[#allocation3 + $0x784] ss:$8 sps:$4 sm:$0xff]   ;;  %v4384_v8 = vld [vmem:[#allocation3 + $0x280] ss:$8 sps:$4 sm:$0xff]  }
  0xdc   :  { %2655 = vmatpush1.bf16.msra.mxu1 %v4306_v9  ;;  %v4387_v9 = vld [vmem:[#allocation3 + $0x780] ss:$8 sps:$4 sm:$0xff]  }
  0xdd   :  { %2860 = vmatpush1.bf16.msra.mxu0 %v4309_v10  ;;  %2656 = vmatprep.subr.bf16.mxu1 %v4314_v11  ;;  %v4392_v10 = vld [vmem:[#allocation3 + $0x294] ss:$8 sps:$4 sm:$0xff]  }
  0xde   :  { %2861 = vmatprep.subr.bf16.mxu0 %v4317_v12  ;;  %v4395_v11 = vld [vmem:[#allocation3 + $0x794] ss:$8 sps:$4 sm:$0xff]   ;;  %v4390_v12 = vld [vmem:[#allocation3 + $0x290] ss:$8 sps:$4 sm:$0xff]  }
  0xe0   :  { %2657 = vmatpush1.bf16.msra.mxu1 %v4312_v13  ;;  %v4393_v13 = vld [vmem:[#allocation3 + $0x790] ss:$8 sps:$4 sm:$0xff]  }
  0xe1   :  { %2862 = vmatpush1.bf16.msra.mxu0 %v4315_v16  ;;  %2658 = vmatprep.subr.bf16.mxu1 %v4320_v17  ;;  %v4398_v16 = vld [vmem:[#allocation3 + $0x2a4] ss:$8 sps:$4 sm:$0xff]  }
  0xe2   :  { %2863 = vmatprep.subr.bf16.mxu0 %v4323_v18  ;;  %v4401_v17 = vld [vmem:[#allocation3 + $0x7a4] ss:$8 sps:$4 sm:$0xff]   ;;  %v4396_v18 = vld [vmem:[#allocation3 + $0x2a0] ss:$8 sps:$4 sm:$0xff]  }
  0xe4   :  { %2659 = vmatpush1.bf16.msra.mxu1 %v4318_v19  ;;  %v4399_v19 = vld [vmem:[#allocation3 + $0x7a0] ss:$8 sps:$4 sm:$0xff]  }
  0xe5   :  { %2864 = vmatpush1.bf16.msra.mxu0 %v4321_v20  ;;  %2660 = vmatprep.subr.bf16.mxu1 %v4326_v22  ;;  %v4404_v20 = vld [vmem:[#allocation3 + $0x2b4] ss:$8 sps:$4 sm:$0xff]  }
  0xe6   :  { %2865 = vmatprep.subr.bf16.mxu0 %v4329_v23  ;;  %v4407_v22 = vld [vmem:[#allocation3 + $0x7b4] ss:$8 sps:$4 sm:$0xff]   ;;  %v4402_v23 = vld [vmem:[#allocation3 + $0x2b0] ss:$8 sps:$4 sm:$0xff]  }
  0xe8   :  { %2661 = vmatpush1.bf16.msra.mxu1 %v4324_v25  ;;  %v4410_v25 = vld [vmem:[#allocation3 + $0x2c4] ss:$8 sps:$4 sm:$0xff]  }
  0xe9   :  { %2866 = vmatpush1.bf16.msra.mxu0 %v4327_v26  ;;  %2662 = vmatprep.subr.bf16.mxu1 %v4332_v27  ;;  %v4413_v26 = vld [vmem:[#allocation3 + $0x7c4] ss:$8 sps:$4 sm:$0xff]   ;;  %v4408_v27 = vld [vmem:[#allocation3 + $0x2c0] ss:$8 sps:$4 sm:$0xff]  }
  0xea   :  { %2867 = vmatprep.subr.bf16.mxu0 %v4335_v29  ;;  %v4411_v29 = vld [vmem:[#allocation3 + $0x7c0] ss:$8 sps:$4 sm:$0xff]  }
  0xec   :  { %2663 = vmatpush1.bf16.msra.mxu1 %v4330_v31  ;;  %v4416_v31 = vld [vmem:[#allocation3 + $0x2d4] ss:$8 sps:$4 sm:$0xff]  }
  0xed   :  { %2868 = vmatpush1.bf16.msra.mxu0 %v4333_v32  ;;  %2673 = vmatprep.subr.bf16.mxu1 %v4338_v33  ;;  %v4419_v32 = vld [vmem:[#allocation3 + $0x7d4] ss:$8 sps:$4 sm:$0xff]   ;;  %v4414_v33 = vld [vmem:[#allocation3 + $0x2d0] ss:$8 sps:$4 sm:$0xff]  }
  0xee   :  { %2878 = vmatprep.subr.bf16.mxu0 %v4341_v34  ;;  %v4417_v34 = vld [vmem:[#allocation3 + $0x7d0] ss:$8 sps:$4 sm:$0xff]  }
  0xef   :  { %2665 = vmatmul.mubr.bf16.vlgmr.msra.gmra.mrb[0].mxu1 %v545_v35  ;;  %v4425_v35 = vld [vmem:[#allocation3 + $0x7e4] ss:$8 sps:$4 sm:$0xff]  }
  0xf0   :  { %2870 = vmatmul.mubr.bf16.vlgmr.msra.gmra.mrb[0].mxu0 %v5098_v36  ;;  %2674 = vmatpush1.bf16.msra.mxu1 %v4336_v37  ;;  %v4420_v37 = vld [vmem:[#allocation3 + $0x2e0] ss:$8 sps:$4 sm:$0xff]  }
  0xf1   :  { %2879 = vmatpush1.bf16.msra.mxu0 %v4339_v38  ;;  %2675 = vmatprep.subr.bf16.mxu1 %v4344_v39  ;;  %v5110_v38 = vld [vmem:[%s5234_s0 + $0x10] sm:$0xff]  ;;  %v4423_v39 = vld [vmem:[#allocation3 + $0x7e0] ss:$8 sps:$4 sm:$0xff]   ;;  %s4929_s0 = smov [#allocation14]  }
  0xf2   :  { %2880 = vmatprep.subr.bf16.mxu0 %v4347_v40  ;;  %2705 = vmatprep.mubr.bf16.mxu1 %v5101_v41  ;;  %v4428_v40 = vld [vmem:[#allocation3 + $0x2f4] ss:$8 sps:$4 sm:$0xff]   ;;  %s3613_s29 = sshll.u32 %s4929_s0, 4  ;;  %s3614_s29 = int_to_ptr.vmem [resolvable:$true] %s3613_s29 }
  0xf3   :  { %2910 = vmatprep.mubr.bf16.mxu0 %v597_v42  ;;  %v4431_v42 = vld [vmem:[#allocation3 + $0x7f4] ss:$8 sps:$4 sm:$0xff]   ;;  %s4883_s30 = scalar_lea.vmem %s3614_s29, 32  ;;  %p4888_p7 = scmp.lt.s32.totalorder %s3614_s29, %s3614_s29 }
  0xf4   :  { %2676 = vmatpush1.bf16.msra.mxu1 %v4342_v14  ;;  %v5114_v14 = vrot.slane %v5110_v38, %v5045_v51  ;;  %p4884_p6 = scmp.ne.s32.totalorder %s3614_s29, %s4883_s30  ;;  %p4889_p8 = scmp.lt.s32.totalorder %s4883_s30, %s4883_s30 }
  0xf5   :  { %2881 = vmatpush1.bf16.msra.mxu0 %v4345_v21  ;;  %2677 = vmatprep.subr.bf16.mxu1 %v4350_v43  ;;  %v4426_v21 = vld [vmem:[#allocation3 + $0x2f0] ss:$8 sps:$4 sm:$0xff]  }
  0xf6   :  { %2882 = vmatprep.subr.bf16.mxu0 %v4353_v44  ;;  %v4429_v43 = vld [vmem:[#allocation3 + $0x7f0] ss:$8 sps:$4 sm:$0xff]   ;;  %v4434_v44 = vld [vmem:[#allocation3 + $0x304] ss:$8 sps:$4 sm:$0xff]   ;;  %p4890_p9 = por %p4889_p8, %p4888_p7 }
  0xf8   :  { %2678 = vmatpush1.bf16.msra.mxu1 %v4348_v45  ;;  %v4437_v45 = vld [vmem:[#allocation3 + $0x804] ss:$8 sps:$4 sm:$0xff]   ;;  %p4891_p10 = pnand %p4890_p9, %p4884_p6 }
  0xf9   :  { %2883 = vmatpush1.bf16.msra.mxu0 %v4351_v47  ;;  %2679 = vmatprep.subr.bf16.mxu1 %v4356_v28  ;;  %v613_v47 = vcombine.high %v5114_v14, %v5114_v14  ;;  %v4432_v28 = vld [vmem:[#allocation3 + $0x300] ss:$8 sps:$4 sm:$0xff]  }
  0xfa   :  { %2884 = vmatprep.subr.bf16.mxu0 %v4359_v48  ;;  %v5120_v48 = vrot.slane %v5090_v30, %v5045_v51  ;;  %v4438_v30 = vld [vmem:[#allocation3 + $0x310] ss:$8 sps:$4 sm:$0xff]  }
  0xfc   :  { %2680 = vmatpush1.bf16.msra.mxu1 %v4354_v49  ;;  %v595_v49 = vcombine.high %v5098_v36, %v5098_v36  ;;  %v4441_v36 = vld [vmem:[#allocation3 + $0x810] ss:$8 sps:$4 sm:$0xff]  }
  0xfd   :  { %2885 = vmatpush1.bf16.msra.mxu0 %v4357_v50  ;;  %2681 = vmatprep.subr.bf16.mxu1 %v4362_v53  ;;  %v4435_v50 = vld [vmem:[#allocation3 + $0x800] ss:$8 sps:$4 sm:$0xff]   ;;  %v4440_v53 = vld [vmem:[#allocation3 + $0x314] ss:$8 sps:$4 sm:$0xff]  }
  0xfe   :  { %2886 = vmatprep.subr.bf16.mxu0 %v4365_v54  ;;  %v4443_v54 = vld [vmem:[#allocation3 + $0x814] ss:$8 sps:$4 sm:$0xff]  }
 0x100   :  { %2682 = vmatpush1.bf16.msra.mxu1 %v4360_v55  ;;  %v548_v55 = vcombine.high %v5101_v41, %v5101_v41  ;;  %v4447_v41 = vld [vmem:[#allocation3 + $0x820] ss:$8 sps:$4 sm:$0xff]  }
 0x101   :  { %2887 = vmatpush1.bf16.msra.mxu0 %v4363_v56  ;;  %2683 = vmatprep.subr.bf16.mxu1 %v4368_v57  ;;  %v5127_v56 = vrot.slane %v613_v47, %v5045_v51  ;;  %v4446_v57 = vld [vmem:[#allocation3 + $0x324] ss:$8 sps:$4 sm:$0xff]   ;;  %v4513_v47 = vld [vmem:[#allocation3 + $0x8d0] ss:$8 sps:$4 sm:$0xff]  }
 0x102   :  { %2888 = vmatprep.subr.bf16.mxu0 %v4371_v58  ;;  %v4449_v58 = vld [vmem:[#allocation3 + $0x824] ss:$8 sps:$4 sm:$0xff]  }
 0x104   :  { %2684 = vmatpush1.bf16.msra.mxu1 %v4366_v59  ;;  %v4444_v59 = vld [vmem:[#allocation3 + $0x320] ss:$8 sps:$4 sm:$0xff]  }
 0x105   :  { %2889 = vmatpush1.bf16.msra.mxu0 %v4369_v60  ;;  %2685 = vmatprep.subr.bf16.mxu1 %v4374_v61  ;;  %v4452_v60 = vld [vmem:[#allocation3 + $0x334] ss:$8 sps:$4 sm:$0xff]  }
 0x106   :  { %2890 = vmatprep.subr.bf16.mxu0 %v4377_v62  ;;  %v4455_v61 = vld [vmem:[#allocation3 + $0x834] ss:$8 sps:$4 sm:$0xff]   ;;  %v4450_v62 = vld [vmem:[#allocation3 + $0x330] ss:$8 sps:$4 sm:$0xff]  }
 0x108   :  { %2686 = vmatpush1.bf16.msra.mxu1 %v4372_v63  ;;  %v4453_v63 = vld [vmem:[#allocation3 + $0x830] ss:$8 sps:$4 sm:$0xff]  }
 0x109   :  { %2891 = vmatpush1.bf16.msra.mxu0 %v4375_v0  ;;  %2687 = vmatprep.subr.bf16.mxu1 %v4380_v1  ;;  %v4458_v0 = vld [vmem:[#allocation3 + $0x344] ss:$8 sps:$4 sm:$0xff]  }
 0x10a   :  { %2892 = vmatprep.subr.bf16.mxu0 %v4383_v2  ;;  %v4461_v1 = vld [vmem:[#allocation3 + $0x844] ss:$8 sps:$4 sm:$0xff]   ;;  %v4456_v2 = vld [vmem:[#allocation3 + $0x340] ss:$8 sps:$4 sm:$0xff]  }
 0x10c   :  { %2688 = vmatpush1.bf16.msra.mxu1 %v4378_v4  ;;  %v4459_v4 = vld [vmem:[#allocation3 + $0x840] ss:$8 sps:$4 sm:$0xff]  }
 0x10d   :  { %2893 = vmatpush1.bf16.msra.mxu0 %v4381_v5  ;;  %2689 = vmatprep.subr.bf16.mxu1 %v4386_v6  ;;  %v4464_v5 = vld [vmem:[#allocation3 + $0x354] ss:$8 sps:$4 sm:$0xff]  }
 0x10e   :  { %2894 = vmatprep.subr.bf16.mxu0 %v4389_v7  ;;  %v4467_v6 = vld [vmem:[#allocation3 + $0x854] ss:$8 sps:$4 sm:$0xff]   ;;  %v4462_v7 = vld [vmem:[#allocation3 + $0x350] ss:$8 sps:$4 sm:$0xff]  }
 0x110   :  { %2690 = vmatpush1.bf16.msra.mxu1 %v4384_v8  ;;  %v4465_v8 = vld [vmem:[#allocation3 + $0x850] ss:$8 sps:$4 sm:$0xff]  }
 0x111   :  { %2895 = vmatpush1.bf16.msra.mxu0 %v4387_v9  ;;  %2691 = vmatprep.subr.bf16.mxu1 %v4392_v10  ;;  %v4470_v9 = vld [vmem:[#allocation3 + $0x364] ss:$8 sps:$4 sm:$0xff]  }
 0x112   :  { %2896 = vmatprep.subr.bf16.mxu0 %v4395_v11  ;;  %v4473_v10 = vld [vmem:[#allocation3 + $0x864] ss:$8 sps:$4 sm:$0xff]   ;;  %v4468_v11 = vld [vmem:[#allocation3 + $0x360] ss:$8 sps:$4 sm:$0xff]  }
 0x114   :  { %2692 = vmatpush1.bf16.msra.mxu1 %v4390_v12  ;;  %v4471_v12 = vld [vmem:[#allocation3 + $0x860] ss:$8 sps:$4 sm:$0xff]  }
 0x115   :  { %2897 = vmatpush1.bf16.msra.mxu0 %v4393_v13  ;;  %2693 = vmatprep.subr.bf16.mxu1 %v4398_v16  ;;  %v4476_v13 = vld [vmem:[#allocation3 + $0x374] ss:$8 sps:$4 sm:$0xff]  }
 0x116   :  { %2898 = vmatprep.subr.bf16.mxu0 %v4401_v17  ;;  %v4479_v16 = vld [vmem:[#allocation3 + $0x874] ss:$8 sps:$4 sm:$0xff]   ;;  %v4474_v17 = vld [vmem:[#allocation3 + $0x370] ss:$8 sps:$4 sm:$0xff]  }
 0x118   :  { %2694 = vmatpush1.bf16.msra.mxu1 %v4396_v18  ;;  %v4477_v18 = vld [vmem:[#allocation3 + $0x870] ss:$8 sps:$4 sm:$0xff]  }
 0x119   :  { %2899 = vmatpush1.bf16.msra.mxu0 %v4399_v19  ;;  %2695 = vmatprep.subr.bf16.mxu1 %v4404_v20  ;;  %v4482_v19 = vld [vmem:[#allocation3 + $0x384] ss:$8 sps:$4 sm:$0xff]  }
 0x11a   :  { %2900 = vmatprep.subr.bf16.mxu0 %v4407_v22  ;;  %v4485_v20 = vld [vmem:[#allocation3 + $0x884] ss:$8 sps:$4 sm:$0xff]   ;;  %v4480_v22 = vld [vmem:[#allocation3 + $0x380] ss:$8 sps:$4 sm:$0xff]  }
 0x11c   :  { %2696 = vmatpush1.bf16.msra.mxu1 %v4402_v23  ;;  %v4483_v23 = vld [vmem:[#allocation3 + $0x880] ss:$8 sps:$4 sm:$0xff]  }
 0x11d   :  { %2901 = vmatpush1.bf16.msra.mxu0 %v4405_v24  ;;  %2697 = vmatprep.subr.bf16.mxu1 %v4410_v25  ;;  %v4488_v24 = vld [vmem:[#allocation3 + $0x394] ss:$8 sps:$4 sm:$0xff]  }
 0x11e   :  { %2902 = vmatprep.subr.bf16.mxu0 %v4413_v26  ;;  %v4491_v25 = vld [vmem:[#allocation3 + $0x894] ss:$8 sps:$4 sm:$0xff]   ;;  %v4486_v26 = vld [vmem:[#allocation3 + $0x390] ss:$8 sps:$4 sm:$0xff]  }
 0x120   :  { %2698 = vmatpush1.bf16.msra.mxu1 %v4408_v27  ;;  %v4489_v27 = vld [vmem:[#allocation3 + $0x890] ss:$8 sps:$4 sm:$0xff]  }
 0x121   :  { %2903 = vmatpush1.bf16.msra.mxu0 %v4411_v29  ;;  %2699 = vmatprep.subr.bf16.mxu1 %v4416_v31  ;;  %v4494_v29 = vld [vmem:[#allocation3 + $0x3a4] ss:$8 sps:$4 sm:$0xff]  }
 0x122   :  { %2904 = vmatprep.subr.bf16.mxu0 %v4419_v32  ;;  %v4497_v31 = vld [vmem:[#allocation3 + $0x8a4] ss:$8 sps:$4 sm:$0xff]   ;;  %v4492_v32 = vld [vmem:[#allocation3 + $0x3a0] ss:$8 sps:$4 sm:$0xff]  }
 0x124   :  { %2700 = vmatpush1.bf16.msra.mxu1 %v4414_v33  ;;  %v4495_v33 = vld [vmem:[#allocation3 + $0x8a0] ss:$8 sps:$4 sm:$0xff]  }
 0x125   :  { %2905 = vmatpush1.bf16.msra.mxu0 %v4417_v34  ;;  %2701 = vmatprep.subr.bf16.mxu1 %v4422_v52  ;;  %v4500_v34 = vld [vmem:[#allocation3 + $0x3b4] ss:$8 sps:$4 sm:$0xff]  }
 0x126   :  { %2906 = vmatprep.subr.bf16.mxu0 %v4425_v35  ;;  %v4503_v52 = vld [vmem:[#allocation3 + $0x8b4] ss:$8 sps:$4 sm:$0xff]   ;;  %v4498_v35 = vld [vmem:[#allocation3 + $0x3b0] ss:$8 sps:$4 sm:$0xff]  }
 0x128   :  { %2702 = vmatpush1.bf16.msra.mxu1 %v4420_v37  ;;  %v4501_v37 = vld [vmem:[#allocation3 + $0x8b0] ss:$8 sps:$4 sm:$0xff]  }
 0x129   :  { %2907 = vmatpush1.bf16.msra.mxu0 %v4423_v39  ;;  %2703 = vmatprep.subr.bf16.mxu1 %v4428_v40  ;;  %v4506_v39 = vld [vmem:[#allocation3 + $0x3c4] ss:$8 sps:$4 sm:$0xff]  }
 0x12a   :  { %2908 = vmatprep.subr.bf16.mxu0 %v4431_v42  ;;  %v4509_v40 = vld [vmem:[#allocation3 + $0x8c4] ss:$8 sps:$4 sm:$0xff]   ;;  %v4504_v42 = vld [vmem:[#allocation3 + $0x3c0] ss:$8 sps:$4 sm:$0xff]  }
 0x12c   :  { %2704 = vmatpush1.bf16.msra.mxu1 %v4426_v21  ;;  %v4507_v21 = vld [vmem:[#allocation3 + $0x8c0] ss:$8 sps:$4 sm:$0xff]  }
 0x12d   :  { %2909 = vmatpush1.bf16.msra.mxu0 %v4429_v43  ;;  %2714 = vmatprep.subr.bf16.mxu1 %v4434_v44  ;;  %v4512_v43 = vld [vmem:[#allocation3 + $0x3d4] ss:$8 sps:$4 sm:$0xff]  }
 0x12e   :  { %2919 = vmatprep.subr.bf16.mxu0 %v4437_v45  ;;  %v4515_v44 = vld [vmem:[#allocation3 + $0x8d4] ss:$8 sps:$4 sm:$0xff]   ;;  %v4510_v45 = vld [vmem:[#allocation3 + $0x3d0] ss:$8 sps:$4 sm:$0xff]  }
 0x12f   :  { %2706 = vmatmul.mubr.bf16.vlgmr.msra.gmra.mrb[0].mxu1 %v5120_v48 }
 0x130   :  { %2911 = vmatmul.mubr.bf16.vlgmr.msra.gmra.mrb[0].mxu0 %v595_v49  ;;  %2715 = vmatpush1.bf16.msra.mxu1 %v4432_v28  ;;  %v4518_v28 = vld [vmem:[#allocation3 + $0x3e4] ss:$8 sps:$4 sm:$0xff]  }
 0x131   :  { %2920 = vmatpush1.bf16.msra.mxu0 %v4435_v50  ;;  %2716 = vmatprep.subr.bf16.mxu1 %v4440_v53  ;;  %v4521_v49 = vld [vmem:[#allocation3 + $0x8e4] ss:$8 sps:$4 sm:$0xff]   ;;  %v4516_v50 = vld [vmem:[#allocation3 + $0x3e0] ss:$8 sps:$4 sm:$0xff]  }
 0x132   :  { %2921 = vmatprep.subr.bf16.mxu0 %v4443_v54  ;;  %2746 = vmatprep.mubr.bf16.mxu1 %v548_v55  ;;  %v4519_v53 = vld [vmem:[#allocation3 + $0x8e0] ss:$8 sps:$4 sm:$0xff]   ;;  %v4524_v54 = vld [vmem:[#allocation3 + $0x3f4] ss:$8 sps:$4 sm:$0xff]  }
 0x133   :  { %2951 = vmatprep.mubr.bf16.mxu0 %v5127_v56  ;;  %v4527_v55 = vld [vmem:[#allocation3 + $0x8f4] ss:$8 sps:$4 sm:$0xff]  }
 0x134   :  { %2717 = vmatpush1.bf16.msra.mxu1 %v4438_v30  ;;  %v4522_v30 = vld [vmem:[#allocation3 + $0x3f0] ss:$8 sps:$4 sm:$0xff]  }
 0x135   :  { %2922 = vmatpush1.bf16.msra.mxu0 %v4441_v36  ;;  %2718 = vmatprep.subr.bf16.mxu1 %v4446_v57  ;;  %v4525_v36 = vld [vmem:[#allocation3 + $0x8f0] ss:$8 sps:$4 sm:$0xff]   ;;  %v4530_v57 = vld [vmem:[#allocation3 + $0x404] ss:$8 sps:$4 sm:$0xff]  }
 0x136   :  { %2923 = vmatprep.subr.bf16.mxu0 %v4449_v58  ;;  %v4533_v58 = vld [vmem:[#allocation3 + $0x904] ss:$8 sps:$4 sm:$0xff]  }
 0x138   :  { %2719 = vmatpush1.bf16.msra.mxu1 %v4444_v59  ;;  %v4528_v59 = vld [vmem:[#allocation3 + $0x400] ss:$8 sps:$4 sm:$0xff]  }
 0x139   :  { %2924 = vmatpush1.bf16.msra.mxu0 %v4447_v41  ;;  %2720 = vmatprep.subr.bf16.mxu1 %v4452_v60  ;;  %v4531_v41 = vld [vmem:[#allocation3 + $0x900] ss:$8 sps:$4 sm:$0xff]   ;;  %v546_v60 = vcombine.high %v5120_v48, %v5120_v48  ;;  %v4542_v48 = vld [vmem:[#allocation3 + $0x424] ss:$8 sps:$4 sm:$0xff]  }
 0x13a   :  { %2925 = vmatprep.subr.bf16.mxu0 %v4455_v61  ;;  %v5135_v61 = vrot.slane %v5114_v14, %v5045_v51  ;;  %v4540_v14 = vld [vmem:[#allocation3 + $0x420] ss:$8 sps:$4 sm:$0xff]  }
 0x13c   :  { %2721 = vmatpush1.bf16.msra.mxu1 %v4450_v62  ;;  %v4536_v62 = vld [vmem:[#allocation3 + $0x414] ss:$8 sps:$4 sm:$0xff]  }
 0x13d   :  { %2926 = vmatpush1.bf16.msra.mxu0 %v4453_v63  ;;  %2722 = vmatprep.subr.bf16.mxu1 %v4458_v0  ;;  %v4539_v63 = vld [vmem:[#allocation3 + $0x914] ss:$8 sps:$4 sm:$0xff]   ;;  %v4534_v0 = vld [vmem:[#allocation3 + $0x410] ss:$8 sps:$4 sm:$0xff]  }
 0x13e   :  { %2927 = vmatprep.subr.bf16.mxu0 %v4461_v1  ;;  %v4537_v1 = vld [vmem:[#allocation3 + $0x910] ss:$8 sps:$4 sm:$0xff]  }
 0x140   :  { %2723 = vmatpush1.bf16.msra.mxu1 %v4456_v2  ;;  %v645_v2 = vcombine.high %v5127_v56, %v5127_v56  ;;  %v4551_v56 = vld [vmem:[#allocation3 + $0x934] ss:$8 sps:$4 sm:$0xff]  }
 0x141   :  { %2928 = vmatpush1.bf16.msra.mxu0 %v4459_v4  ;;  %2724 = vmatprep.subr.bf16.mxu1 %v4464_v5  ;;  %v4545_v4 = vld [vmem:[#allocation3 + $0x924] ss:$8 sps:$4 sm:$0xff]   ;;  %v4543_v5 = vld [vmem:[#allocation3 + $0x920] ss:$8 sps:$4 sm:$0xff]  }
 0x142   :  { %2929 = vmatprep.subr.bf16.mxu0 %v4467_v6  ;;  %v4548_v6 = vld [vmem:[#allocation3 + $0x434] ss:$8 sps:$4 sm:$0xff]  }
 0x144   :  { %2725 = vmatpush1.bf16.msra.mxu1 %v4462_v7  ;;  %v4546_v7 = vld [vmem:[#allocation3 + $0x430] ss:$8 sps:$4 sm:$0xff]  }
 0x145   :  { %2930 = vmatpush1.bf16.msra.mxu0 %v4465_v8  ;;  %2726 = vmatprep.subr.bf16.mxu1 %v4470_v9  ;;  %v4549_v8 = vld [vmem:[#allocation3 + $0x930] ss:$8 sps:$4 sm:$0xff]   ;;  %v4554_v9 = vld [vmem:[#allocation3 + $0x444] ss:$8 sps:$4 sm:$0xff]  }
 0x146   :  { %2931 = vmatprep.subr.bf16.mxu0 %v4473_v10  ;;  %v4557_v10 = vld [vmem:[#allocation3 + $0x944] ss:$8 sps:$4 sm:$0xff]  }
 0x148   :  { %2727 = vmatpush1.bf16.msra.mxu1 %v4468_v11  ;;  %v4555_v11 = vld [vmem:[#allocation3 + $0x940] ss:$8 sps:$4 sm:$0xff]  }
 0x149   :  { %2932 = vmatpush1.bf16.msra.mxu0 %v4471_v12  ;;  %2728 = vmatprep.subr.bf16.mxu1 %v4476_v13  ;;  %v4560_v12 = vld [vmem:[#allocation3 + $0x454] ss:$8 sps:$4 sm:$0xff]  }
 0x14a   :  { %2933 = vmatprep.subr.bf16.mxu0 %v4479_v16  ;;  %v4563_v13 = vld [vmem:[#allocation3 + $0x954] ss:$8 sps:$4 sm:$0xff]   ;;  %v4558_v16 = vld [vmem:[#allocation3 + $0x450] ss:$8 sps:$4 sm:$0xff]  }
 0x14c   :  { %2729 = vmatpush1.bf16.msra.mxu1 %v4474_v17  ;;  %v4561_v17 = vld [vmem:[#allocation3 + $0x950] ss:$8 sps:$4 sm:$0xff]  }
 0x14d   :  { %2934 = vmatpush1.bf16.msra.mxu0 %v4477_v18  ;;  %2730 = vmatprep.subr.bf16.mxu1 %v4482_v19  ;;  %v4566_v18 = vld [vmem:[#allocation3 + $0x464] ss:$8 sps:$4 sm:$0xff]  }
 0x14e   :  { %2935 = vmatprep.subr.bf16.mxu0 %v4485_v20  ;;  %v4569_v19 = vld [vmem:[#allocation3 + $0x964] ss:$8 sps:$4 sm:$0xff]   ;;  %v4564_v20 = vld [vmem:[#allocation3 + $0x460] ss:$8 sps:$4 sm:$0xff]  }
 0x150   :  { %2731 = vmatpush1.bf16.msra.mxu1 %v4480_v22  ;;  %v4567_v22 = vld [vmem:[#allocation3 + $0x960] ss:$8 sps:$4 sm:$0xff]  }
 0x151   :  { %2936 = vmatpush1.bf16.msra.mxu0 %v4483_v23  ;;  %2732 = vmatprep.subr.bf16.mxu1 %v4488_v24  ;;  %v4572_v23 = vld [vmem:[#allocation3 + $0x474] ss:$8 sps:$4 sm:$0xff]  }
 0x152   :  { %2937 = vmatprep.subr.bf16.mxu0 %v4491_v25  ;;  %v4575_v24 = vld [vmem:[#allocation3 + $0x974] ss:$8 sps:$4 sm:$0xff]   ;;  %v4570_v25 = vld [vmem:[#allocation3 + $0x470] ss:$8 sps:$4 sm:$0xff]  }
 0x154   :  { %2733 = vmatpush1.bf16.msra.mxu1 %v4486_v26  ;;  %v4573_v26 = vld [vmem:[#allocation3 + $0x970] ss:$8 sps:$4 sm:$0xff]  }
 0x155   :  { %2938 = vmatpush1.bf16.msra.mxu0 %v4489_v27  ;;  %2734 = vmatprep.subr.bf16.mxu1 %v4494_v29  ;;  %v4578_v27 = vld [vmem:[#allocation3 + $0x484] ss:$8 sps:$4 sm:$0xff]  }
 0x156   :  { %2939 = vmatprep.subr.bf16.mxu0 %v4497_v31  ;;  %v4581_v29 = vld [vmem:[#allocation3 + $0x984] ss:$8 sps:$4 sm:$0xff]   ;;  %v4576_v31 = vld [vmem:[#allocation3 + $0x480] ss:$8 sps:$4 sm:$0xff]  }
 0x158   :  { %2735 = vmatpush1.bf16.msra.mxu1 %v4492_v32  ;;  %v4579_v32 = vld [vmem:[#allocation3 + $0x980] ss:$8 sps:$4 sm:$0xff]  }
 0x159   :  { %2940 = vmatpush1.bf16.msra.mxu0 %v4495_v33  ;;  %2736 = vmatprep.subr.bf16.mxu1 %v4500_v34  ;;  %v4584_v33 = vld [vmem:[#allocation3 + $0x494] ss:$8 sps:$4 sm:$0xff]  }
 0x15a   :  { %2941 = vmatprep.subr.bf16.mxu0 %v4503_v52  ;;  %v4587_v34 = vld [vmem:[#allocation3 + $0x994] ss:$8 sps:$4 sm:$0xff]   ;;  %v4582_v52 = vld [vmem:[#allocation3 + $0x490] ss:$8 sps:$4 sm:$0xff]  }
 0x15c   :  { %2737 = vmatpush1.bf16.msra.mxu1 %v4498_v35  ;;  %v4585_v35 = vld [vmem:[#allocation3 + $0x990] ss:$8 sps:$4 sm:$0xff]  }
 0x15d   :  { %2942 = vmatpush1.bf16.msra.mxu0 %v4501_v37  ;;  %2738 = vmatprep.subr.bf16.mxu1 %v4506_v39  ;;  %v4590_v37 = vld [vmem:[#allocation3 + $0x4a4] ss:$8 sps:$4 sm:$0xff]  }
 0x15e   :  { %2943 = vmatprep.subr.bf16.mxu0 %v4509_v40  ;;  %v4593_v39 = vld [vmem:[#allocation3 + $0x9a4] ss:$8 sps:$4 sm:$0xff]   ;;  %v4588_v40 = vld [vmem:[#allocation3 + $0x4a0] ss:$8 sps:$4 sm:$0xff]  }
 0x160   :  { %2739 = vmatpush1.bf16.msra.mxu1 %v4504_v42  ;;  %v4591_v42 = vld [vmem:[#allocation3 + $0x9a0] ss:$8 sps:$4 sm:$0xff]  }
 0x161   :  { %2944 = vmatpush1.bf16.msra.mxu0 %v4507_v21  ;;  %2740 = vmatprep.subr.bf16.mxu1 %v4512_v43  ;;  %v4596_v21 = vld [vmem:[#allocation3 + $0x4b4] ss:$8 sps:$4 sm:$0xff]  }
 0x162   :  { %2945 = vmatprep.subr.bf16.mxu0 %v4515_v44  ;;  %v4599_v43 = vld [vmem:[#allocation3 + $0x9b4] ss:$8 sps:$4 sm:$0xff]   ;;  %v4594_v44 = vld [vmem:[#allocation3 + $0x4b0] ss:$8 sps:$4 sm:$0xff]  }
 0x164   :  { %2741 = vmatpush1.bf16.msra.mxu1 %v4510_v45  ;;  %v4597_v45 = vld [vmem:[#allocation3 + $0x9b0] ss:$8 sps:$4 sm:$0xff]  }
 0x165   :  { %2946 = vmatpush1.bf16.msra.mxu0 %v4513_v47  ;;  %2742 = vmatprep.subr.bf16.mxu1 %v4518_v28  ;;  %v4602_v47 = vld [vmem:[#allocation3 + $0x4c4] ss:$8 sps:$4 sm:$0xff]  }
 0x166   :  { %2947 = vmatprep.subr.bf16.mxu0 %v4521_v49  ;;  %v4605_v28 = vld [vmem:[#allocation3 + $0x9c4] ss:$8 sps:$4 sm:$0xff]   ;;  %v4600_v49 = vld [vmem:[#allocation3 + $0x4c0] ss:$8 sps:$4 sm:$0xff]  }
 0x168   :  { %2743 = vmatpush1.bf16.msra.mxu1 %v4516_v50  ;;  %v4603_v50 = vld [vmem:[#allocation3 + $0x9c0] ss:$8 sps:$4 sm:$0xff]  }
 0x169   :  { %2948 = vmatpush1.bf16.msra.mxu0 %v4519_v53  ;;  %2744 = vmatprep.subr.bf16.mxu1 %v4524_v54  ;;  %v4608_v53 = vld [vmem:[#allocation3 + $0x4d4] ss:$8 sps:$4 sm:$0xff]  }
 0x16a   :  { %2949 = vmatprep.subr.bf16.mxu0 %v4527_v55  ;;  %v4611_v54 = vld [vmem:[#allocation3 + $0x9d4] ss:$8 sps:$4 sm:$0xff]   ;;  %v4606_v55 = vld [vmem:[#allocation3 + $0x4d0] ss:$8 sps:$4 sm:$0xff]  }
 0x16c   :  { %2745 = vmatpush1.bf16.msra.mxu1 %v4522_v30  ;;  %v4609_v30 = vld [vmem:[#allocation3 + $0x9d0] ss:$8 sps:$4 sm:$0xff]  }
 0x16d   :  { %2950 = vmatpush1.bf16.msra.mxu0 %v4525_v36  ;;  %2755 = vmatprep.subr.bf16.mxu1 %v4530_v57  ;;  %v598_v36 = vcombine.high %v5110_v38, %v5110_v38  ;;  %v4614_v57 = vld [vmem:[#allocation3 + $0x4e4] ss:$8 sps:$4 sm:$0xff]  }
 0x16e   :  { %2960 = vmatprep.subr.bf16.mxu0 %v4533_v58  ;;  %v4617_v58 = vld [vmem:[#allocation3 + $0x9e4] ss:$8 sps:$4 sm:$0xff]  }
 0x16f   :  { %2747 = vmatmul.mubr.bf16.vlgmr.msra.gmra.mrb[0].mxu1 %v546_v60  ;;  %v5144_v60 = vrot.slane %v598_v36, %v5045_v51  ;;  %v4699_v36 = vld [vmem:[#allocation3 + $0xb84] ss:$8 sps:$4 sm:$0xff]  }
 0x170   :  { %2952 = vmatmul.mubr.bf16.vlgmr.msra.gmra.mrb[0].mxu0 %v5135_v61  ;;  %2756 = vmatpush1.bf16.msra.mxu1 %v4528_v59  ;;  %v4612_v59 = vld [vmem:[#allocation3 + $0x4e0] ss:$8 sps:$4 sm:$0xff]  }
 0x171   :  { %2961 = vmatpush1.bf16.msra.mxu0 %v4531_v41  ;;  %2757 = vmatprep.subr.bf16.mxu1 %v4536_v62  ;;  %v4615_v41 = vld [vmem:[#allocation3 + $0x9e0] ss:$8 sps:$4 sm:$0xff]   ;;  %v4620_v62 = vld [vmem:[#allocation3 + $0x4f4] ss:$8 sps:$4 sm:$0xff]   ;;  %v614_v38 = vcombine.high %v5144_v60, %v5144_v60 }
 0x172   :  { %2962 = vmatprep.subr.bf16.mxu0 %v4539_v63  ;;  %2787 = vmatprep.mubr.bf16.mxu1 %v5062_v3  ;;  %v4552_v3 = vld [vmem:[#allocation3 + $0x440] ss:$8 sps:$4 sm:$0xff]   ;;  %v4623_v63 = vld [vmem:[#allocation3 + $0x9f4] ss:$8 sps:$4 sm:$0xff]  }
 0x173   :  { %2992 = vmatprep.mubr.bf16.mxu0 %v645_v2  ;;  %v4626_v2 = vld [vmem:[#allocation3 + $0xa04] ss:$8 sps:$4 sm:$0xff]  }
 0x174   :  { %2758 = vmatpush1.bf16.msra.mxu1 %v4534_v0  ;;  %v4618_v0 = vld [vmem:[#allocation3 + $0x4f0] ss:$8 sps:$4 sm:$0xff]  }
 0x175   :  { %2963 = vmatpush1.bf16.msra.mxu0 %v4537_v1  ;;  %2759 = vmatprep.subr.bf16.mxu1 %v4542_v48  ;;  %v4621_v1 = vld [vmem:[#allocation3 + $0x9f0] ss:$8 sps:$4 sm:$0xff]   ;;  %v643_v48 = vcombine.high %v5135_v61, %v5135_v61  ;;  %v4635_v61 = vld [vmem:[#allocation3 + $0xa34] ss:$8 sps:$4 sm:$0xff]  }
 0x176   :  { %2964 = vmatprep.subr.bf16.mxu0 %v4545_v4  ;;  %v4624_v4 = vld [vmem:[#allocation3 + $0xa00] ss:$8 sps:$4 sm:$0xff]  }
 0x178   :  { %2760 = vmatpush1.bf16.msra.mxu1 %v4540_v14  ;;  %v5151_v14 = vrot.slane %v614_v38, %v5045_v51  ;;  %v4714_v38 = vld [vmem:[#allocation3 + $0xbd4] ss:$8 sps:$4 sm:$0xff]  }
 0x179   :  { %2965 = vmatpush1.bf16.msra.mxu0 %v4543_v5  ;;  %2761 = vmatprep.subr.bf16.mxu1 %v4548_v6  ;;  %v4629_v5 = vld [vmem:[#allocation3 + $0xa14] ss:$8 sps:$4 sm:$0xff]   ;;  %v4627_v6 = vld [vmem:[#allocation3 + $0xa10] ss:$8 sps:$4 sm:$0xff]  }
 0x17a   :  { %2966 = vmatprep.subr.bf16.mxu0 %v4551_v56  ;;  %v4632_v56 = vld [vmem:[#allocation3 + $0xa24] ss:$8 sps:$4 sm:$0xff]  }
 0x17c   :  { %2762 = vmatpush1.bf16.msra.mxu1 %v4546_v7  ;;  %v4630_v7 = vld [vmem:[#allocation3 + $0xa20] ss:$8 sps:$4 sm:$0xff]  }
 0x17d   :  { %2967 = vmatpush1.bf16.msra.mxu0 %v4549_v8  ;;  %2763 = vmatprep.subr.bf16.mxu1 %v4554_v9  ;;  %v4633_v8 = vld [vmem:[#allocation3 + $0xa30] ss:$8 sps:$4 sm:$0xff]   ;;  %v4638_v9 = vld [vmem:[#allocation3 + $0xa44] ss:$8 sps:$4 sm:$0xff]  }
 0x17e   :  { %2968 = vmatprep.subr.bf16.mxu0 %v4557_v10  ;;  %v4636_v10 = vld [vmem:[#allocation3 + $0xa40] ss:$8 sps:$4 sm:$0xff]  }
 0x180   :  { %2764 = vmatpush1.bf16.msra.mxu1 %v4552_v3  ;;  %v4641_v3 = vld [vmem:[#allocation3 + $0xa54] ss:$8 sps:$4 sm:$0xff]  }
 0x181   :  { %2969 = vmatpush1.bf16.msra.mxu0 %v4555_v11  ;;  %2765 = vmatprep.subr.bf16.mxu1 %v4560_v12  ;;  %v4644_v11 = vld [vmem:[#allocation3 + $0xa64] ss:$8 sps:$4 sm:$0xff]   ;;  %v4642_v12 = vld [vmem:[#allocation3 + $0xa60] ss:$8 sps:$4 sm:$0xff]  }
 0x182   :  { %2970 = vmatprep.subr.bf16.mxu0 %v4563_v13  ;;  %v4647_v13 = vld [vmem:[#allocation3 + $0xa74] ss:$8 sps:$4 sm:$0xff]  }
 0x184   :  { %2766 = vmatpush1.bf16.msra.mxu1 %v4558_v16  ;;  %v4645_v16 = vld [vmem:[#allocation3 + $0xa70] ss:$8 sps:$4 sm:$0xff]  }
 0x185   :  { %2971 = vmatpush1.bf16.msra.mxu0 %v4561_v17  ;;  %2767 = vmatprep.subr.bf16.mxu1 %v4566_v18  ;;  %v4650_v17 = vld [vmem:[#allocation3 + $0xa84] ss:$8 sps:$4 sm:$0xff]   ;;  %v4648_v18 = vld [vmem:[#allocation3 + $0xa80] ss:$8 sps:$4 sm:$0xff]  }
 0x186   :  { %2972 = vmatprep.subr.bf16.mxu0 %v4569_v19  ;;  %v4653_v19 = vld [vmem:[#allocation3 + $0xa94] ss:$8 sps:$4 sm:$0xff]  }
 0x188   :  { %2768 = vmatpush1.bf16.msra.mxu1 %v4564_v20  ;;  %v4651_v20 = vld [vmem:[#allocation3 + $0xa90] ss:$8 sps:$4 sm:$0xff]  }
 0x189   :  { %2973 = vmatpush1.bf16.msra.mxu0 %v4567_v22  ;;  %2769 = vmatprep.subr.bf16.mxu1 %v4572_v23  ;;  %v4656_v22 = vld [vmem:[#allocation3 + $0xaa4] ss:$8 sps:$4 sm:$0xff]   ;;  %v4654_v23 = vld [vmem:[#allocation3 + $0xaa0] ss:$8 sps:$4 sm:$0xff]  }
 0x18a   :  { %2974 = vmatprep.subr.bf16.mxu0 %v4575_v24  ;;  %v4659_v24 = vld [vmem:[#allocation3 + $0xab4] ss:$8 sps:$4 sm:$0xff]  }
 0x18c   :  { %2770 = vmatpush1.bf16.msra.mxu1 %v4570_v25  ;;  %v4657_v25 = vld [vmem:[#allocation3 + $0xab0] ss:$8 sps:$4 sm:$0xff]  }
 0x18d   :  { %2975 = vmatpush1.bf16.msra.mxu0 %v4573_v26  ;;  %2771 = vmatprep.subr.bf16.mxu1 %v4578_v27  ;;  %v4662_v26 = vld [vmem:[#allocation3 + $0xac4] ss:$8 sps:$4 sm:$0xff]   ;;  %v4660_v27 = vld [vmem:[#allocation3 + $0xac0] ss:$8 sps:$4 sm:$0xff]  }
 0x18e   :  { %2976 = vmatprep.subr.bf16.mxu0 %v4581_v29  ;;  %v4665_v29 = vld [vmem:[#allocation3 + $0xad4] ss:$8 sps:$4 sm:$0xff]  }
 0x190   :  { %2772 = vmatpush1.bf16.msra.mxu1 %v4576_v31  ;;  %v4663_v31 = vld [vmem:[#allocation3 + $0xad0] ss:$8 sps:$4 sm:$0xff]  }
 0x191   :  { %2977 = vmatpush1.bf16.msra.mxu0 %v4579_v32  ;;  %2773 = vmatprep.subr.bf16.mxu1 %v4584_v33  ;;  %v4668_v32 = vld [vmem:[#allocation3 + $0xae4] ss:$8 sps:$4 sm:$0xff]   ;;  %v4666_v33 = vld [vmem:[#allocation3 + $0xae0] ss:$8 sps:$4 sm:$0xff]  }
 0x192   :  { %2978 = vmatprep.subr.bf16.mxu0 %v4587_v34  ;;  %v4671_v34 = vld [vmem:[#allocation3 + $0xaf4] ss:$8 sps:$4 sm:$0xff]  }
 0x194   :  { %2774 = vmatpush1.bf16.msra.mxu1 %v4582_v52  ;;  %v4669_v52 = vld [vmem:[#allocation3 + $0xaf0] ss:$8 sps:$4 sm:$0xff]  }
 0x195   :  { %2979 = vmatpush1.bf16.msra.mxu0 %v4585_v35  ;;  %2775 = vmatprep.subr.bf16.mxu1 %v4590_v37  ;;  %v4675_v35 = vld [vmem:[#allocation3 + $0xb04] ss:$8 sps:$4 sm:$0xff]   ;;  %v5157_v37 = vrot.slane %v5144_v60, %v5045_v51  ;;  %v4682_v51 = vld [vmem:[#allocation3 + $0xb30] ss:$8 sps:$4 sm:$0xff]   ;;  %v4703_v60 = vld [vmem:[#allocation3 + $0xba0] ss:$8 sps:$4 sm:$0xff]  }
 0x196   :  { %2980 = vmatprep.subr.bf16.mxu0 %v4593_v39  ;;  %v4673_v39 = vld [vmem:[#allocation3 + $0xb00] ss:$8 sps:$4 sm:$0xff]  }
 0x198   :  { %2776 = vmatpush1.bf16.msra.mxu1 %v4588_v40  ;;  %v646_v40 = vcombine.high %v5151_v14, %v5151_v14 }
 0x199   :  { %2981 = vmatpush1.bf16.msra.mxu0 %v4591_v42  ;;  %2777 = vmatprep.subr.bf16.mxu1 %v4596_v21  ;;  %v4678_v42 = vld [vmem:[#allocation3 + $0xb14] ss:$8 sps:$4 sm:$0xff]   ;;  %v4676_v21 = vld [vmem:[#allocation3 + $0xb10] ss:$8 sps:$4 sm:$0xff]  }
 0x19a   :  { %2982 = vmatprep.subr.bf16.mxu0 %v4599_v43  ;;  %v4681_v43 = vld [vmem:[#allocation3 + $0xb24] ss:$8 sps:$4 sm:$0xff]  }
 0x19c   :  { %2778 = vmatpush1.bf16.msra.mxu1 %v4594_v44  ;;  %v4679_v44 = vld [vmem:[#allocation3 + $0xb20] ss:$8 sps:$4 sm:$0xff]  }
 0x19d   :  { %2983 = vmatpush1.bf16.msra.mxu0 %v4597_v45  ;;  %2779 = vmatprep.subr.bf16.mxu1 %v4602_v47  ;;  %v4684_v45 = vld [vmem:[#allocation3 + $0xb34] ss:$8 sps:$4 sm:$0xff]   ;;  %v4687_v47 = vld [vmem:[#allocation3 + $0xb44] ss:$8 sps:$4 sm:$0xff]  }
 0x19e   :  { %2984 = vmatprep.subr.bf16.mxu0 %v4605_v28  ;;  %v4685_v28 = vld [vmem:[#allocation3 + $0xb40] ss:$8 sps:$4 sm:$0xff]  }
 0x1a0   :  { %2780 = vmatpush1.bf16.msra.mxu1 %v4600_v49  ;;  %v4690_v49 = vld [vmem:[#allocation3 + $0xb54] ss:$8 sps:$4 sm:$0xff]  }
 0x1a1   :  { %2985 = vmatpush1.bf16.msra.mxu0 %v4603_v50  ;;  %2781 = vmatprep.subr.bf16.mxu1 %v4608_v53  ;;  %v4688_v50 = vld [vmem:[#allocation3 + $0xb50] ss:$8 sps:$4 sm:$0xff]   ;;  %v4693_v53 = vld [vmem:[#allocation3 + $0xb64] ss:$8 sps:$4 sm:$0xff]  }
 0x1a2   :  { %2986 = vmatprep.subr.bf16.mxu0 %v4611_v54  ;;  %v4691_v54 = vld [vmem:[#allocation3 + $0xb60] ss:$8 sps:$4 sm:$0xff]  }
 0x1a4   :  { %2782 = vmatpush1.bf16.msra.mxu1 %v4606_v55  ;;  %v4696_v55 = vld [vmem:[#allocation3 + $0xb74] ss:$8 sps:$4 sm:$0xff]  }
 0x1a5   :  { %2987 = vmatpush1.bf16.msra.mxu0 %v4609_v30  ;;  %2783 = vmatprep.subr.bf16.mxu1 %v4614_v57  ;;  %v4694_v30 = vld [vmem:[#allocation3 + $0xb70] ss:$8 sps:$4 sm:$0xff]   ;;  %v4697_v57 = vld [vmem:[#allocation3 + $0xb80] ss:$8 sps:$4 sm:$0xff]  }
 0x1a6   :  { %2988 = vmatprep.subr.bf16.mxu0 %v4617_v58  ;;  %v4702_v58 = vld [vmem:[#allocation3 + $0xb94] ss:$8 sps:$4 sm:$0xff]  }
 0x1a8   :  { %2784 = vmatpush1.bf16.msra.mxu1 %v4612_v59  ;;  %v4700_v59 = vld [vmem:[#allocation3 + $0xb90] ss:$8 sps:$4 sm:$0xff]  }
 0x1a9   :  { %2989 = vmatpush1.bf16.msra.mxu0 %v4615_v41  ;;  %2785 = vmatprep.subr.bf16.mxu1 %v4620_v62  ;;  %v4705_v41 = vld [vmem:[#allocation3 + $0xba4] ss:$8 sps:$4 sm:$0xff]   ;;  %v4708_v62 = vld [vmem:[#allocation3 + $0xbb4] ss:$8 sps:$4 sm:$0xff]  }
 0x1aa   :  { %2990 = vmatprep.subr.bf16.mxu0 %v4623_v63  ;;  %v4706_v63 = vld [vmem:[#allocation3 + $0xbb0] ss:$8 sps:$4 sm:$0xff]  }
 0x1ac   :  { %2786 = vmatpush1.bf16.msra.mxu1 %v4618_v0  ;;  %v4711_v0 = vld [vmem:[#allocation3 + $0xbc4] ss:$8 sps:$4 sm:$0xff]  }
 0x1ad   :  { %2991 = vmatpush1.bf16.msra.mxu0 %v4621_v1  ;;  %v4709_v1 = vld [vmem:[#allocation3 + $0xbc0] ss:$8 sps:$4 sm:$0xff]  }
 0x1ae   :  { %3001 = vmatprep.subr.bf16.mxu0 %v4626_v2  ;;  %v4712_v2 = vld [vmem:[#allocation3 + $0xbd0] ss:$8 sps:$4 sm:$0xff]  }
 0x1af   :  { %2788 = vmatmul.mubr.bf16.vlgmr.msra.gmra.mrb[0].mxu1 %v5071_v15  ;;  %v4639_v15 = vld [vmem:[#allocation3 + $0xa50] ss:$8 sps:$4 sm:$0xff]  }
 0x1b0   :  { %2993 = vmatmul.mubr.bf16.vlgmr.msra.gmra.mrb[0].mxu0 %v643_v48  ;;  %v4717_v48 = vld [vmem:[#allocation3 + $0xbe4] ss:$8 sps:$4 sm:$0xff]  }
 0x1b1   :  { %3002 = vmatpush1.bf16.msra.mxu0 %v4624_v4  ;;  %3033 = vmatprep.mubr.bf16.mxu0 %v5151_v14  ;;  %v4715_v4 = vld [vmem:[#allocation3 + $0xbe0] ss:$8 sps:$4 sm:$0xff]   ;;  %v4720_v14 = vld [vmem:[#allocation3 + $0xbf4] ss:$8 sps:$4 sm:$0xff]  }
 0x1b2   :  { %3003 = vmatprep.subr.bf16.mxu0 %v4629_v5  ;;  %v4718_v5 = vld [vmem:[#allocation3 + $0xbf0] ss:$8 sps:$4 sm:$0xff]  }
 0x1b5   :  { %3004 = vmatpush1.bf16.msra.mxu0 %v4627_v6  ;;  %v644_v6 = vcombine.high %v5157_v37, %v5157_v37 }
 0x1b6   :  { %3005 = vmatprep.subr.bf16.mxu0 %v4632_v56 }
 0x1b9   :  { %3006 = vmatpush1.bf16.msra.mxu0 %v4630_v7  ;;  %v4926_v7 = vmov 0.0  }
 0x1ba   :  { %3007 = vmatprep.subr.bf16.mxu0 %v4635_v61  ;;  %108 = vst [vmem:[#allocation2] sm:$0xf] %v4926_v7 }
 0x1bd   :  { %3008 = vmatpush1.bf16.msra.mxu0 %v4633_v8 }
 0x1be   :  { %3009 = vmatprep.subr.bf16.mxu0 %v4638_v9 }
 0x1c1   :  { %3010 = vmatpush1.bf16.msra.mxu0 %v4636_v10  ;;  %v4721_v10 = vld [vmem:[#allocation8 + $0x40] sm:$0xff]  }
 0x1c2   :  { %3011 = vmatprep.subr.bf16.mxu0 %v4641_v3  ;;  %v4722_v3 = vld [vmem:[#allocation8] sm:$0xff]   ;;  %4034 = vmatprep.subr.bf16.mxu1 %v4721_v10 }
 0x1c3   :  { %4035 = vmatpush3.bf16.msra.mxu1 %v4722_v3 }
 0x1c5   :  { %3012 = vmatpush1.bf16.msra.mxu0 %v4639_v15  ;;  %v4723_v15 = vld [vmem:[#allocation8 + $0x48] sm:$0xff]  }
 0x1c6   :  { %3013 = vmatprep.subr.bf16.mxu0 %v4644_v11  ;;  %v4724_v11 = vld [vmem:[#allocation8 + $0x8] sm:$0xff]   ;;  %4036 = vmatprep.subr.bf16.mxu1 %v4723_v15 }
 0x1c7   :  { %4037 = vmatpush3.bf16.msra.mxu1 %v4724_v11 }
 0x1c9   :  { %3014 = vmatpush1.bf16.msra.mxu0 %v4642_v12  ;;  %v4725_v12 = vld [vmem:[#allocation8 + $0x50] sm:$0xff]  }
 0x1ca   :  { %3015 = vmatprep.subr.bf16.mxu0 %v4647_v13  ;;  %v4726_v13 = vld [vmem:[#allocation8 + $0x10] sm:$0xff]   ;;  %4038 = vmatprep.subr.bf16.mxu1 %v4725_v12 }
 0x1cb   :  { %4039 = vmatpush3.bf16.msra.mxu1 %v4726_v13 }
 0x1cd   :  { %3016 = vmatpush1.bf16.msra.mxu0 %v4645_v16  ;;  %v4727_v16 = vld [vmem:[#allocation8 + $0x58] sm:$0xff]  }
 0x1ce   :  { %3017 = vmatprep.subr.bf16.mxu0 %v4650_v17  ;;  %v4728_v17 = vld [vmem:[#allocation8 + $0x18] sm:$0xff]   ;;  %4040 = vmatprep.subr.bf16.mxu1 %v4727_v16 }
 0x1cf   :  { %4041 = vmatpush3.bf16.msra.mxu1 %v4728_v17 }
 0x1d1   :  { %3018 = vmatpush1.bf16.msra.mxu0 %v4648_v18  ;;  %v4729_v18 = vld [vmem:[#allocation8 + $0x60] sm:$0xff]  }
 0x1d2   :  { %3019 = vmatprep.subr.bf16.mxu0 %v4653_v19  ;;  %v4730_v19 = vld [vmem:[#allocation8 + $0x20] sm:$0xff]   ;;  %4042 = vmatprep.subr.bf16.mxu1 %v4729_v18 }
 0x1d3   :  { %4043 = vmatpush3.bf16.msra.mxu1 %v4730_v19 }
 0x1d5   :  { %3020 = vmatpush1.bf16.msra.mxu0 %v4651_v20  ;;  %v4731_v20 = vld [vmem:[#allocation8 + $0x68] sm:$0xff]  }
 0x1d6   :  { %3021 = vmatprep.subr.bf16.mxu0 %v4656_v22  ;;  %v4732_v22 = vld [vmem:[#allocation8 + $0x28] sm:$0xff]   ;;  %4044 = vmatprep.subr.bf16.mxu1 %v4731_v20 }
 0x1d7   :  { %4045 = vmatpush3.bf16.msra.mxu1 %v4732_v22 }
 0x1d9   :  { %3022 = vmatpush1.bf16.msra.mxu0 %v4654_v23  ;;  %v4733_v23 = vld [vmem:[#allocation8 + $0x70] sm:$0xff]  }
 0x1da   :  { %3023 = vmatprep.subr.bf16.mxu0 %v4659_v24  ;;  %v4734_v24 = vld [vmem:[#allocation8 + $0x30] sm:$0xff]   ;;  %4046 = vmatprep.subr.bf16.mxu1 %v4733_v23 }
 0x1db   :  { %4047 = vmatpush3.bf16.msra.mxu1 %v4734_v24 }
 0x1dd   :  { %3024 = vmatpush1.bf16.msra.mxu0 %v4657_v25  ;;  %v4735_v25 = vld [vmem:[#allocation8 + $0x78] sm:$0xff]  }
 0x1de   :  { %3025 = vmatprep.subr.bf16.mxu0 %v4662_v26  ;;  %v4736_v26 = vld [vmem:[#allocation8 + $0x38] sm:$0xff]   ;;  %4048 = vmatprep.subr.bf16.mxu1 %v4735_v25 }
 0x1df   :  { %4049 = vmatpush3.bf16.msra.mxu1 %v4736_v26 }
 0x1e0   :  { %4065 = vmatprep.subr.bf16.mxu1 %v4926_v7 }
 0x1e1   :  { %3026 = vmatpush1.bf16.msra.mxu0 %v4660_v27  ;;  %v4927_v27 = vmov 1983009808  }
 0x1e2   :  { %3027 = vmatprep.subr.bf16.mxu0 %v4665_v29  ;;  %v3087_v29 = vunpack.c.l.s4 %v4927_v27 }
 0x1e5   :  { %3028 = vmatpush1.bf16.msra.mxu0 %v4663_v31  ;;  %v3088_v31 = vunpack.c.0.s8 %v3087_v29 }
 0x1e6   :  { %3029 = vmatprep.subr.bf16.mxu0 %v4668_v32  ;;  %v5167_v32 = vsub.s32 0, %v5042_v46 }
 0x1e9   :  { %3030 = vmatpush1.bf16.msra.mxu0 %v4666_v33  ;;  %v3108_v33 = vsub.s32 4, %v5042_v46 }
 0x1ea   :  { %3031 = vmatprep.subr.bf16.mxu0 %v4671_v34  ;;  %v5170_v34 = vld [vmem:[#allocation6] sm:$0x77] }
 0x1ed   :  { %3032 = vmatpush1.bf16.msra.mxu0 %v4669_v52 }
 0x1ee   :  { %3042 = vmatprep.subr.bf16.mxu0 %v4675_v35 }
 0x1f0   :  { %3034 = vmatmul.mubr.bf16.vlgmr.msra.gmra.mrb[0].mxu0 %v5157_v37 }
 0x1f1   :  { %3043 = vmatpush1.bf16.msra.mxu0 %v4673_v39  ;;  %3074 = vmatprep.mubr.bf16.mxu0 %v646_v40  ;;  %v5173_v40 = vsub.s32 %v3088_v31, %v5042_v46 }
 0x1f2   :  { %3044 = vmatprep.subr.bf16.mxu0 %v4678_v42 }
 0x1f5   :  { %3045 = vmatpush1.bf16.msra.mxu0 %v4676_v21  ;;  %v3105_v21 = vrot.slane %v5170_v34, %v5167_v32 }
 0x1f6   :  { %3046 = vmatprep.subr.bf16.mxu0 %v4681_v43  ;;  %v3109_v43 = vrot.slane %v5170_v34, %v3108_v33 }
 0x1f9   :  { %3047 = vmatpush1.bf16.msra.mxu0 %v4679_v44 }
 0x1fa   :  { %3048 = vmatprep.subr.bf16.mxu0 %v4684_v45 }
 0x1fd   :  { %3049 = vmatpush1.bf16.msra.mxu0 %v4682_v51  ;;  %v109_v51 = vld [vmem:[#allocation2] sm:$0xf] }
 0x1fe   :  { %3050 = vmatprep.subr.bf16.mxu0 %v4687_v47 }
 0x201   :  { %3051 = vmatpush1.bf16.msra.mxu0 %v4685_v28  ;;  %v3115_v28 = vrot.slane %v3105_v21, %v5167_v32 }
 0x202   :  { %3052 = vmatprep.subr.bf16.mxu0 %v4690_v49  ;;  %v3119_v49 = vrot.slane %v3109_v43, %v5167_v32 }
 0x205   :  { %3053 = vmatpush1.bf16.msra.mxu0 %v4688_v50 }
 0x206   :  { %3054 = vmatprep.subr.bf16.mxu0 %v4693_v53  ;;  %v3122_v53 = vcombine.low %v3115_v28, %v3119_v49 }
 0x209   :  { %3055 = vmatpush1.bf16.msra.mxu0 %v4691_v54  ;;  %v3129_v54 = vrot.slane %v3122_v53, %v5173_v40 }
 0x20a   :  { %3056 = vmatprep.subr.bf16.mxu0 %v4696_v55 }
 0x20d   :  { %3057 = vmatpush1.bf16.msra.mxu0 %v4694_v30 }
 0x20e   :  { %3058 = vmatprep.subr.bf16.mxu0 %v4699_v36 }
 0x211   :  { %3059 = vmatpush1.bf16.msra.mxu0 %v4697_v57 }
 0x212   :  { %3060 = vmatprep.subr.bf16.mxu0 %v4702_v58 }
 0x215   :  { %3061 = vmatpush1.bf16.msra.mxu0 %v4700_v59 }
 0x216   :  { %3062 = vmatprep.subr.bf16.mxu0 %v4705_v41 }
 0x219   :  { %3063 = vmatpush1.bf16.msra.mxu0 %v4703_v60 }
 0x21a   :  { %3064 = vmatprep.subr.bf16.mxu0 %v4708_v62 }
 0x21d   :  { %3065 = vmatpush1.bf16.msra.mxu0 %v4706_v63 }
 0x21e   :  { %3066 = vmatprep.subr.bf16.mxu0 %v4711_v0 }
 0x221   :  { %3067 = vmatpush1.bf16.msra.mxu0 %v4709_v1 }
 0x222   :  { %3068 = vmatprep.subr.bf16.mxu0 %v4714_v38 }
 0x225   :  { %3069 = vmatpush1.bf16.msra.mxu0 %v4712_v2 }
 0x226   :  { %3070 = vmatprep.subr.bf16.mxu0 %v4717_v48 }
 0x229   :  { %3071 = vmatpush1.bf16.msra.mxu0 %v4715_v4 }
 0x22a   :  { %3072 = vmatprep.subr.bf16.mxu0 %v4720_v14 }
 0x22d   :  { %3073 = vmatpush1.bf16.msra.mxu0 %v4718_v5 }
 0x230   :  { %3075 = vmatmul.mubr.bf16.vlgmr.msra.gmra.mrb[0].mxu0 %v644_v6 }
 0x282   :  { %v2789_v56 = vpop.f32.mrb[0].mxu1 }
 0x283   :  { %v2791_v61 = vpop.f32.mrb[1].mxu1 }
 0x284   :  { %v2793_v8 = vpop.f32.mrb[2].mxu1 }
 0x285   :  { %v2794_v9 = vpop.f32.mrb[3].mxu1 }
 0x303   :  { %v3076_v52 = vpop.f32.mrb[0].mxu0 }
 0x304   :  { %v4085_v35 = vadd.f32 %v3076_v52, %v2789_v56  ;;  %v3078_v37 = vpop.f32.mrb[1].mxu0 }
 0x305   :  { %v4086_v39 = vadd.f32 %v3078_v37, %v2791_v61  ;;  %v3080_v42 = vpop.f32.mrb[2].mxu0  ;;  %v3247_v37 = vsub.s32 6, %v5042_v46 }
 0x306   :  { %v3081_v44 = vpop.f32.mrb[3].mxu0 }
 0x307   :  { %v3085_v45 = vcombine.low %v4085_v35, %v4086_v39  ;;  %v5190_v35 = vsub.s32 2, %v5042_v46  ;;  %v3248_v44 = vrot.slane %v5170_v34, %v3247_v37 }
 0x309   :  { %v3092_v47 = vrot.slane %v3085_v45, %v5173_v40  ;;  %v3244_v43 = vrot.slane %v5170_v34, %v5190_v35 }
 0x30b   :  { %v3094_v50 = vadd.f32 %v3092_v47, %v109_v51  ;;  %v5197_v51 = vsub.s32 1, %v5042_v46  ;;  %v3217_v47 = vsub.s32 5, %v5042_v46  ;;  %v3254_v49 = vrot.slane %v3244_v43, %v5190_v35 }
 0x30d   :  { %3095 = vst [vmem:[#allocation2] sm:$0xf] %v3094_v50  ;;  %v3258_v50 = vrot.slane %v3248_v44, %v5190_v35 }
 0x314   :  { %v3100_v55 = vld [vmem:[#allocation2] sm:$0xf] }
 0x315   :  { %v3131_v30 = vadd.f32 %v3129_v54, %v3100_v55 }
 0x317   :  { %v3139_v36 = vrot.slane %v3131_v30, %v5173_v40 }
 0x319   :  { %v3140_v57 = vcombine.high %v3139_v36, %v3139_v36  ;;  %v3144_v58 = vsel %vm3143_vm0, %v3139_v36, 0.0  ;;  %v3261_v36 = vcombine.low %v3254_v49, %v3258_v50  ;;  %v4025_v49 = vld [vmem:[#allocation12] ss:$0 sm:$0xff] }
 0x31a   :  { %v3145_v59 = vrot.slane %v3144_v58, 4 }
 0x31b   :  { %v3151_v41 = vsel %vm3143_vm0, %v3140_v57, 0.0 }
 0x31c   :  { %v3146_v60 = vadd.f32 %v3145_v59, %v3144_v58  ;;  %v3152_v62 = vrot.slane %v3151_v41, 4  ;;  %v3268_v59 = vrot.slane %v3261_v36, %v5173_v40 }
 0x31e   :  { %v3147_v63 = vrot.slane %v3146_v60, 2  ;;  %v3153_v0 = vadd.f32 %v3152_v62, %v3151_v41 }
 0x320   :  { %v3148_v1 = vadd.f32 %v3147_v63, %v3146_v60  ;;  %v3154_v38 = vrot.slane %v3153_v0, 2 }
 0x322   :  { %v3149_v2 = vrot.slane %v3148_v1, 1  ;;  %v3155_v48 = vadd.f32 %v3154_v38, %v3153_v0  ;;  %v4737_v38 = vld [vmem:[#allocation11] sm:$0xff]  }
 0x324   :  { %v3150_v4 = vadd.f32 %v3149_v2, %v3148_v1  ;;  %v3156_v14 = vrot.slane %v3155_v48, 1  ;;  %v4738_v2 = vld [vmem:[#allocation11 + $0x8] sm:$0xff]  }
 0x326   :  { %v3157_v5 = vadd.f32 %v3156_v14, %v3155_v48  ;;  %v3158_v6 = vmul.f32 0.5, %v3150_v4  ;;  %v4739_v48 = vld [vmem:[#allocation11 + $0x10] sm:$0xff]   ;;  %v4740_v4 = vld [vmem:[#allocation11 + $0x18] sm:$0xff]   ;;  %v4742_v14 = vld [vmem:[#allocation11 + $0x28] sm:$0xff]  }
 0x328   :  { %v3159_v56 = vmul.f32 0.5, %v3157_v5  ;;  %v4743_v5 = vld [vmem:[#allocation11 + $0x30] sm:$0xff]  }
 0x32a   :  { %v3162_v61 = vcombine.low %v3158_v6, %v3159_v56  ;;  %v4744_v6 = vld [vmem:[#allocation11 + $0x38] sm:$0xff]  }
 0x32b   :  { %v3274_v56 = vld [vmem:[#allocation9] sm:$0x7] }
 0x32c   :  { %v3169_v8 = vrot.slane %v3162_v61, %v5173_v40 }
 0x32e   :  { %v3171_v9 = vsub.f32 %v3131_v30, %v3169_v8  ;;  %v3323_v8 = vrot.slane %v3274_v56, %v5167_v32 }
 0x330   :  { %v3172_v10 = vmul.f32 %v3171_v9, %v3171_v9 }
 0x332   :  { %v3180_v3 = vrot.slane %v3172_v10, %v5173_v40 }
 0x334   :  { %v3181_v15 = vcombine.high %v3180_v3, %v3180_v3  ;;  %v3184_v11 = vsel %vm3143_vm0, %v3180_v3, 0.0 }
 0x335   :  { %v3185_v12 = vrot.slane %v3184_v11, 4 }
 0x336   :  { %v3191_v13 = vsel %vm3143_vm0, %v3181_v15, 0.0 }
 0x337   :  { %v3186_v16 = vadd.f32 %v3185_v12, %v3184_v11  ;;  %v3192_v17 = vrot.slane %v3191_v13, 4 }
 0x339   :  { %v3187_v18 = vrot.slane %v3186_v16, 2  ;;  %v3193_v19 = vadd.f32 %v3192_v17, %v3191_v13 }
 0x33b   :  { %v3188_v20 = vadd.f32 %v3187_v18, %v3186_v16  ;;  %v3194_v22 = vrot.slane %v3193_v19, 2 }
 0x33d   :  { %v3189_v23 = vrot.slane %v3188_v20, 1  ;;  %v3195_v24 = vadd.f32 %v3194_v22, %v3193_v19 }
 0x33f   :  { %v3190_v25 = vadd.f32 %v3189_v23, %v3188_v20  ;;  %v3196_v26 = vrot.slane %v3195_v24, 1 }
 0x341   :  { %v3197_v27 = vadd.f32 %v3196_v26, %v3195_v24  ;;  %v3198_v29 = vmul.f32 0.5, %v3190_v25 }
 0x343   :  { %v3199_v31 = vmul.f32 0.5, %v3197_v27  ;;  %v3200_v33 = vadd.f32 1e-05, %v3198_v29 }
 0x345   :  { %v3201_v52 = vadd.f32 1e-05, %v3199_v31  ;;  %4745 = vrsqrt.f32 %v3200_v33 }
 0x347   :  { %4747 = vrsqrt.f32 %v3201_v52 }
 0x34f   :  { %v4746_v39 = vpop.eup %4745 }
 0x351   :  { %v4748_v42 = vpop.eup %4747 }
 0x352   :  { %v3206_v21 = vcombine.low %v4746_v39, %v4748_v42 }
 0x354   :  { %v3207_v45 = vrot.slane %v3206_v21, 7  ;;  %v3489_v21 = vrot.slane %v3274_v56, %v5190_v35 }
 0x356   :  { %v3209_v28 = vmul.f32 %v3207_v45, %v5170_v34 }
 0x358   :  { %v3214_v53 = vrot.slane %v3209_v28, %v5197_v51  ;;  %v3218_v54 = vrot.slane %v3209_v28, %v3217_v47 }
 0x35a   :  { %v3224_v55 = vrot.slane %v3214_v53, %v5197_v51  ;;  %v3228_v30 = vrot.slane %v3218_v54, %v5197_v51 }
 0x35c   :  { %v3231_v57 = vcombine.low %v3224_v55, %v3228_v30 }
 0x35e   :  { %v3238_v58 = vrot.slane %v3231_v57, %v5173_v40 }
 0x360   :  { %v3240_v46 = vmul.f32 %v3238_v58, %v3171_v9 }
 0x362   :  { %v3270_v41 = vadd.f32 %v3268_v59, %v3240_v46 }
 0x364   :  { %vm3271_vm1 = vcmp.ge.f32.partialorder %v3270_v41, 0.0  ;;  %v3272_v34 = vmul.f32 0.01, %v3270_v41 }
 0x366   :  { %v3273_v60 = vsel %vm3271_vm1, %v3270_v41, %v3272_v34 }
 0x367   :  { %v3282_v62 = vrot.slane %v3273_v60, %v5173_v40  ;;  %v4741_v40 = vld [vmem:[#allocation11 + $0x20] sm:$0xff]  }
 0x369   :  { %v3283_v63 = vcombine.high %v3282_v62, %v3282_v62  ;;  %v3286_v1 = vpack.c.bf16 %v3282_v62, %v3282_v62 }
 0x36b   :  { %v3287_v0 = vpack.c.bf16 %v3283_v63, %v3283_v63 }
 0x36d   :  { %3452 = vmatprep.mubr.bf16.mxu1 %v3287_v0 }
 0x36e   :  { %3453 = vmatmul.mubr.bf16.vlgmr.msra.gmra.mrb[4].mxu1 %v3286_v1 }
 0x36f   :  { %4066 = vmatpush3.bf16.msra.mxu1 %v4737_v38  ;;  %4081 = vmatprep.mubr.msk.bf16.mxu1 %vm4928_vm2, %v4926_v7 }
 0x370   :  { %4067 = vmatprep.subr.bf16.mxu1 %v4926_v7 }
 0x373   :  { %4068 = vmatpush3.bf16.msra.mxu1 %v4738_v2 }
 0x374   :  { %4069 = vmatprep.subr.bf16.mxu1 %v4926_v7 }
 0x377   :  { %4070 = vmatpush3.bf16.msra.mxu1 %v4739_v48 }
 0x378   :  { %4071 = vmatprep.subr.bf16.mxu1 %v4926_v7 }
 0x37b   :  { %4072 = vmatpush3.bf16.msra.mxu1 %v4740_v4 }
 0x37c   :  { %4073 = vmatprep.subr.bf16.mxu1 %v4926_v7 }
 0x37f   :  { %4074 = vmatpush3.bf16.msra.mxu1 %v4741_v40 }
 0x380   :  { %4075 = vmatprep.subr.bf16.mxu1 %v4926_v7 }
 0x383   :  { %4076 = vmatpush3.bf16.msra.mxu1 %v4742_v14 }
 0x384   :  { %4077 = vmatprep.subr.bf16.mxu1 %v4926_v7 }
 0x387   :  { %4078 = vmatpush3.bf16.msra.mxu1 %v4743_v5 }
 0x388   :  { %4079 = vmatprep.subr.bf16.mxu1 %v4926_v7 }
 0x38b   :  { %4080 = vmatpush3.bf16.msra.mxu1 %v4744_v6 }
 0x441   :  { %v4050_v61 = vpop.f32.mrb[4].mxu1 }
 0x442   :  { %v4051_v9 = vpop.f32.mrb[5].mxu1 }
 0x443   :  { %v4052_v10 = vadd.f32 %v4051_v9, %v4050_v61  ;;  %v4053_v3 = vpop.f32.mrb[6].mxu1 }
 0x444   :  { %v4054_v15 = vpop.f32.mrb[7].mxu1 }
 0x445   :  { %v3455_v11 = vadd.f32 %v4052_v10, %v3323_v8 }
 0x447   :  { %v3460_v12 = vsel %vm3143_vm0, %v3455_v11, 0.0 }
 0x448   :  { %v3461_v13 = vrot.slane %v3460_v12, 4 }
 0x44a   :  { %v3462_v16 = vadd.f32 %v3461_v13, %v3460_v12 }
 0x44c   :  { %v3463_v17 = vrot.slane %v3462_v16, 2 }
 0x44e   :  { %v3464_v18 = vadd.f32 %v3463_v17, %v3462_v16 }
 0x450   :  { %v3465_v19 = vrot.slane %v3464_v18, 1 }
 0x452   :  { %v3466_v20 = vadd.f32 %v3465_v19, %v3464_v18 }
 0x454   :  { %v3467_v22 = vmul.f32 0.5, %v3466_v20 }
 0x456   :  { %v3468_v7 = vsub.f32 %v3455_v11, %v3467_v22 }
 0x458   :  { %v3469_v23 = vmul.f32 %v3468_v7, %v3468_v7 }
 0x45a   :  { %v3470_v24 = vsel %vm3143_vm0, %v3469_v23, 0.0 }
 0x45b   :  { %v3471_v25 = vrot.slane %v3470_v24, 4 }
 0x45d   :  { %v3472_v32 = vadd.f32 %v3471_v25, %v3470_v24 }
 0x45f   :  { %v3473_v26 = vrot.slane %v3472_v32, 2 }
 0x461   :  { %v3474_v27 = vadd.f32 %v3473_v26, %v3472_v32 }
 0x463   :  { %v3475_v29 = vrot.slane %v3474_v27, 1 }
 0x465   :  { %v3476_v31 = vadd.f32 %v3475_v29, %v3474_v27 }
 0x467   :  { %v3477_v33 = vmul.f32 0.5, %v3476_v31 }
 0x469   :  { %v3478_v52 = vadd.f32 1e-05, %v3477_v33 }
 0x46b   :  { %4749 = vrsqrt.f32 %v3478_v52 }
 0x475   :  { %v4750_v37 = vpop.eup %4749 }
 0x476   :  { %v3480_v39 = vmul.f32 %v4750_v37, %v3274_v56 }
 0x478   :  { %v3484_v42 = vrot.slane %v3480_v39, %v5197_v51 }
 0x47a   :  { %v3485_v43 = vmul.f32 %v3484_v42, %v3468_v7 }
 0x47c   :  { %v3490_v44 = vadd.f32 %v3489_v21, %v3485_v43 }
 0x47e   :  { %vm3491_vm3 = vcmp.ge.f32.partialorder %v3490_v44, 0.0  ;;  %v3492_v45 = vmul.f32 0.01, %v3490_v44 }
 0x480   :  { %v3493_v47 = vsel %vm3491_vm3, %v3490_v44, %v3492_v45 }
 0x481   :  { %v3494_v28 = vpack.c.bf16 %v3493_v47, %v3493_v47 }
 0x483   :  { %4082 = vmatmul.mubr.bf16.vlgmr.msra.gmra.mrb[8].mxu1 %v3494_v28 }
 0x556   :  { %v3600_v50 = vpop.f32.mrb[8].mxu1 }
 0x557   :  { %v3601_v53 = vadd.f32 %v4025_v49, %v3600_v50  ;;  %v4083_v54 = vpop.f32.mrb[9].mxu1 }
 0x558   :  { %v3603_v55 = vpop.f32.mrb[10].mxu1 }
 0x559   :  { %3606 = vst [vmem:[#allocation14] sm:$0x3] %v3601_v53  ;;  %v4084_v30 = vpop.f32.mrb[11].mxu1 }
 0x55a   :  { %4894 = shalt.err (!%p4891_p10)
}
 0x55b   :  { %s4895_s10 = scalar_lea.hbm %s5241_s7, 32 }
 0x55c   :  { %p4896_p11 = scmp.ne.s32.totalorder %s5241_s7, %s4895_s10  ;;  %p4899_p12 = scmp.lt.u32.totalorder %s4895_s10, %s5241_s7 }
 0x55e   :  { %p4901_p13 = pnand %p4899_p12, %p4896_p11 }
 0x560   :  { %4904 = shalt.err (!%p4901_p13)
}
 0x561   :  { %3616 = dma.vmem_to_hbm [thread:$0]  %s3614_s29, 32, %s5241_s7, [#allocation5]  }
 0x562   :  { %4913 = dma.done.wait [#allocation5], 32  }
 0x563   :  { %4914 = vsyncadd [#allocation5], 4294967264 }
 0x564   :  { %3620 = vsyncpa [#allocation4], 1 }
 0x565   :  { %3621 = vsyncpa [#allocation7], 1 }
 0x566   :  { %3622 = vsyncpa [#allocation10], 1 }
 0x567   :  { %3623 = vsyncpa [#allocation13], 1 }
 0x568   :  { %3624 = vsyncpa [#allocation5], 1 }

</bundles_post_ra>
